<compile_context>
chip_gen: v7x
topology: tpu7x:2x2x1
jax: 0.10.0
libtpu: 0.0.40
codegen_flags: <defaults>
</compile_context>

<pallas_src>
import math

import numpy as np
import jax
import jax.numpy as jnp
from jax.experimental import pallas as pl
from jax.experimental.pallas import tpu as pltpu


def _round_up(x, m):
    return ((x + m - 1) // m) * m


def _vmem_budget():
    """~75% of physical VMEM per core (48 MiB on v7x, 96 MiB on v5e/v6e)."""
    cap = 64 * 1024 * 1024
    try:
        info = pltpu.get_tpu_info()
        cap = int(getattr(info, "vmem_capacity_bytes", cap))
    except Exception:
        pass
    return (cap * 3) // 4


def _pick_time_chunk(T, B, Din, Hp, budget, requested=None):
    """Largest Tc (divisor of T, sublane-friendly) that fits the VMEM budget."""
    G = 3 * Hp
    fixed = (2 * Din * G * 2 * 2        # wih fwd+bwd, bf16, double-buffered
             + 2 * Hp * G * 2 * 2       # whh fwd+bwd, bf16, double-buffered
             + 2 * B * Hp * 4           # carried h scratch (f32, fwd+bwd)
             + (4 << 20))               # biases/lens + compiler-internal headroom
    # per-timestep bytes: x blocks (2 windows, dbuf, bf16) + out blocks (2, dbuf,
    # bf16) + gi scratch (2, f32)
    per_t = B * (8 * Din + 8 * Hp + 8 * G)
    cap = max(1, (budget - fixed) // per_t)
    cap = min(cap, T)
    if requested is not None:
        cap = min(cap, int(requested))
    best = None
    for tc in range(cap, 0, -1):
        if T % tc:
            continue
        if (tc * B) % 16 == 0:          # bf16-safe second-minor block dim
            return tc
        if best is None:
            best = tc
    return best if best is not None else T


def _pick_row_chunk(R, Hp, Cp, budget, requested=None):
    fixed = 2 * Hp * Cp * 2 * 2 + (4 << 20)      # head weights (bf16, dbuf)
    per_r = 8 * Hp + 8 * Cp                      # xf+xb (bf16, dbuf) + out (f32, dbuf)
    cap = max(8, (budget - fixed) // per_r)
    cap = min(cap, R)
    if requested is not None:
        cap = min(cap, int(requested))
    best = None
    for rc in range(cap, 0, -1):
        if R % rc:
            continue
        if rc % 16 == 0:
            return rc
        if best is None and rc % 8 == 0:
            best = rc
    return best if best is not None else R


# ----------------------------------------------------------------------------
# Fused bidirectional GRU layer kernel
# ----------------------------------------------------------------------------
def _make_gru_kernel(Tc, B, Hp, row_splits, last_layer):
    """Both directions in one grid step, grid = (nc,) over time chunks.

    Step c processes forward chunk c and backward chunk nc-1-c, so both
    recurrences advance in their natural order while their independent
    dependency chains interleave in the VLIW schedule.
    row_splits: static (row_offset, row_count) into wih for each x input part.
    """
    nx = len(row_splits)
    G = 3 * Hp
    align = 16 if B % 16 == 0 else 8

    def kernel(*args):
        xs_c = args[0:nx]                       # fwd chunk c input parts (bf16)
        xs_r = args[nx:2 * nx]                  # bwd chunk nc-1-c input parts (bf16)
        (lens_ref, wih_f_ref, wih_b_ref, whh_f_ref, whh_b_ref,
         bgi_f_ref, bgi_b_ref, bhn_f_ref, bhn_b_ref) = args[2 * nx:2 * nx + 9]
        out_f_ref, out_b_ref = args[2 * nx + 9:2 * nx + 11]
        hf_scr, hb_scr, gif_scr, gib_scr = args[2 * nx + 11:2 * nx + 15]

        c = pl.program_id(0)
        nc = pl.num_programs(0)

        @pl.when(c == 0)
        def _():
            hf_scr[...] = jnp.zeros_like(hf_scr)
            hb_scr[...] = jnp.zeros_like(hb_scr)

        # Hoisted input projection for the whole chunk (one MXU matmul per input
        # part, f32 accumulation, biases folded in once).
        def project(xs, wih_ref, bgi_ref):
            acc = None
            for x_ref, (off, cnt) in zip(xs, row_splits):
                part = jnp.dot(x_ref[...], wih_ref[off:off + cnt, :],
                               preferred_element_type=jnp.float32)
                acc = part if acc is None else acc + part
            return acc + bgi_ref[...]

        gif_scr[...] = project(xs_c, wih_f_ref, bgi_f_ref)
        gib_scr[...] = project(xs_r, wih_b_ref, bgi_b_ref)

        whh_f = whh_f_ref[...]
        whh_b = whh_b_ref[...]
        bhn_f = jnp.broadcast_to(bhn_f_ref[...], (B, Hp))    # hoisted broadcasts
        bhn_b = jnp.broadcast_to(bhn_b_ref[...], (B, Hp))
        lens = lens_ref[...]                                 # (B, 1) int32

        t0_f = c * Tc
        t0_b = (nc - 1 - c) * Tc

        def gates(gi, gh, bhn, h):
            r = jax.nn.sigmoid(gi[:, :Hp] + gh[:, :Hp])
            z = jax.nn.sigmoid(gi[:, Hp:2 * Hp] + gh[:, Hp:2 * Hp])
            n = jnp.tanh(gi[:, 2 * Hp:] + r * (gh[:, 2 * Hp:] + bhn))
            return (1.0 - z) * n + z * h

        def body(i, carry):
            hf, hb = carry
            # --- forward: local step i of chunk c ---
            tlf = i
            gif = gif_scr[pl.ds(pl.multiple_of(tlf * B, align), B), :]
            ghf = jnp.dot(hf.astype(jnp.bfloat16), whh_f,
                          preferred_element_type=jnp.float32)
            cand_f = gates(gif, ghf, bhn_f, hf)
            mf = (t0_f + tlf) < lens
            hf = jnp.where(mf, cand_f, hf)          # packed-sequence masking
            # --- backward: local step Tc-1-i of chunk nc-1-c ---
            tlb = Tc - 1 - i
            gib = gib_scr[pl.ds(pl.multiple_of(tlb * B, align), B), :]
            ghb = jnp.dot(hb.astype(jnp.bfloat16), whh_b,
                          preferred_element_type=jnp.float32)
            cand_b = gates(gib, ghb, bhn_b, hb)
            mb = (t0_b + tlb) < lens
            hb = jnp.where(mb, cand_b, hb)
            if last_layer:
                # pad_packed_sequence(padding_value=-1): heads see -1 at t >= len
                of = jnp.where(mf, hf, -1.0)
                ob = jnp.where(mb, hb, -1.0)
            else:
                of, ob = hf, hb
            out_f_ref[tlf] = of.astype(out_f_ref.dtype)
            out_b_ref[tlb] = ob.astype(out_b_ref.dtype)
            return (hf, hb)

        hf_fin, hb_fin = jax.lax.fori_loop(
            0, Tc, body, (hf_scr[...], hb_scr[...]), unroll=min(Tc, 8))
        hf_scr[...] = hf_fin
        hb_scr[...] = hb_fin

    return kernel


def gru_fused_layer(x_parts, part_dims, lens, layer, T, B, *, last_layer,
                    budget, time_chunk=None):
    """One bidirectional GRU layer; returns (out_fwd, out_bwd), each (T,B,Hp) bf16.

    x_parts: tuple of time-major flattened (T*B, dim) bf16 arrays whose feature
    concatenation is the layer input (1 part for layer 0, 2 for later layers).
    """
    Hp = layer["Hp"]
    G = 3 * Hp
    Din = sum(part_dims)
    Tc = _pick_time_chunk(T, B, Din, Hp, budget, time_chunk)
    nc = T // Tc

    row_splits, off = [], 0
    for d in part_dims:
        row_splits.append((off, d))
        off += d

    kernel = _make_gru_kernel(Tc, B, Hp, tuple(row_splits), last_layer)

    def fwd2(c):
        return (c, 0)

    def rev2(c):
        return (nc - 1 - c, 0)

    def fwd3(c):
        return (c, 0, 0)

    def rev3(c):
        return (nc - 1 - c, 0, 0)

    def full(c):
        return (0, 0)

    x_specs = ([pl.BlockSpec((Tc * B, d), fwd2) for d in part_dims]
               + [pl.BlockSpec((Tc * B, d), rev2) for d in part_dims])
    w_specs = [
        pl.BlockSpec((B, 1), full),                             # lens
        pl.BlockSpec(tuple(layer["wih_f"].shape), full),
        pl.BlockSpec(tuple(layer["wih_b"].shape), full),
        pl.BlockSpec((Hp, G), full),
        pl.BlockSpec((Hp, G), full),
        pl.BlockSpec((1, G), full),
        pl.BlockSpec((1, G), full),
        pl.BlockSpec((1, Hp), full),
        pl.BlockSpec((1, Hp), full),
    ]

    out_f, out_b = pl.pallas_call(
        kernel,
        out_shape=(jax.ShapeDtypeStruct((T, B, Hp), jnp.bfloat16),
                   jax.ShapeDtypeStruct((T, B, Hp), jnp.bfloat16)),
        grid=(nc,),
        in_specs=x_specs + w_specs,
        out_specs=(pl.BlockSpec((Tc, B, Hp), fwd3),
                   pl.BlockSpec((Tc, B, Hp), rev3)),
        scratch_shapes=[
            pltpu.VMEM((B, Hp), jnp.float32),        # h fwd (carried across chunks)
            pltpu.VMEM((B, Hp), jnp.float32),        # h bwd
            pltpu.VMEM((Tc * B, G), jnp.float32),    # hoisted input projection fwd
            pltpu.VMEM((Tc * B, G), jnp.float32),    # hoisted input projection bwd
        ],
        compiler_params=pltpu.CompilerParams(
            dimension_semantics=("arbitrary",),
            vmem_limit_bytes=budget,
        ),
    )(*x_parts, *x_parts, lens,
      layer["wih_f"], layer["wih_b"], layer["whh_f"], layer["whh_b"],
      layer["bgi_f"], layer["bgi_b"], layer["bhn_f"], layer["bhn_b"])
    return out_f, out_b


# ----------------------------------------------------------------------------
# Fused output heads (pure bf16 matmul, lane-dense output, no mask input)
# ----------------------------------------------------------------------------
def head_kernel(xf_ref, xb_ref, wf_ref, wb_ref, b_ref, out_ref):
    out_ref[...] = (
        jnp.dot(xf_ref[...], wf_ref[...], preferred_element_type=jnp.float32)
        + jnp.dot(xb_ref[...], wb_ref[...], preferred_element_type=jnp.float32)
        + b_ref[...]
    )


def head_call(xf, xb, w_f, w_b, b, budget, row_chunk=None):
    R, Hp = xf.shape
    Cp = w_f.shape[1]
    Rc = _pick_row_chunk(R, Hp, Cp, budget, row_chunk)
    nr = R // Rc

    def rows(c):
        return (c, 0)

    def full(c):
        return (0, 0)

    return pl.pallas_call(
        head_kernel,
        out_shape=jax.ShapeDtypeStruct((R, Cp), jnp.float32),
        grid=(nr,),
        in_specs=[
            pl.BlockSpec((Rc, Hp), rows),
            pl.BlockSpec((Rc, Hp), rows),
            pl.BlockSpec((Hp, Cp), full),
            pl.BlockSpec((Hp, Cp), full),
            pl.BlockSpec((1, Cp), full),
        ],
        out_specs=pl.BlockSpec((Rc, Cp), rows),
        compiler_params=pltpu.CompilerParams(
            dimension_semantics=("parallel",),
            vmem_limit_bytes=budget,
        ),
    )(xf, xb, w_f, w_b, b)


# ----------------------------------------------------------------------------
# Full forward
# ----------------------------------------------------------------------------
def mt_rnn_dp_forward(x_bct, lengths, kparams, *, gru_time_chunk=None,
                      head_row_chunk=None):
    """Pallas forward. x_bct: (B, input_dim, T) f32; lengths: host int array."""
    lengths = np.asarray(lengths)
    B0, D = x_bct.shape[0], x_bct.shape[1]
    t_eff = int(lengths.max())                      # pad_packed_sequence length
    x = jnp.transpose(x_bct, (2, 0, 1))[:t_eff]     # (T, B, D); dropout == identity
    T = t_eff
    Bp = _round_up(max(B0, 1), 8)                   # sublane-align the batch
    if Bp != B0:
        x = jnp.pad(x, ((0, 0), (0, Bp - B0), (0, 0)))
    x = x.astype(jnp.bfloat16)
    lens_np = np.zeros((Bp, 1), np.int32)
    lens_np[:B0, 0] = lengths
    lens = jnp.asarray(lens_np)

    budget = _vmem_budget()
    Hp = kparams["Hp"]
    n_layers = len(kparams["layers"])

    parts = (x.reshape(T * Bp, D),)
    part_dims = (D,)
    for li, layer in enumerate(kparams["layers"]):
        out_f, out_b = gru_fused_layer(
            parts, part_dims, lens, layer, T, Bp,
            last_layer=(li == n_layers - 1), budget=budget,
            time_chunk=gru_time_chunk)
        parts = (out_f.reshape(T * Bp, Hp), out_b.reshape(T * Bp, Hp))
        part_dims = (Hp, Hp)

    o = head_call(parts[0], parts[1], kparams["head_wf"], kparams["head_wb"],
                  kparams["head_b"], budget, head_row_chunk)      # (T*Bp, Cp)
    o = o.reshape(T, Bp, -1)
    outputs, col = [], 0
    for C in kparams["num_classes_list"]:
        outputs.append(jnp.transpose(o[:, :B0, col:col + C], (1, 2, 0)))  # (B,C,T)
        col += C
    return outputs


# ----------------------------------------------------------------------------
# Parameters: logical (PyTorch-shaped) init + padded/split kernel layout
# ----------------------------------------------------------------------------
def init_params(key, input_dim, hidden_dim, num_classes_list, num_layers=2):
    H = hidden_dim
    kr = 1.0 / math.sqrt(H)
    layers = []
    dims = [input_dim] + [2 * H] * (num_layers - 1)
    for l in range(num_layers):
        D = dims[l]
        dirs = {}
        for dname in ("fwd", "bwd"):
            key, k1, k2, k3, k4 = jax.random.split(key, 5)
            dirs[dname] = dict(
                w_ih_T=jax.random.uniform(k1, (D, 3 * H), jnp.float32, -kr, kr),
                w_hh_T=jax.random.uniform(k2, (H, 3 * H), jnp.float32, -kr, kr),
                b_ih=jax.random.uniform(k3, (3 * H,), jnp.float32, -kr, kr),
                b_hh=jax.random.uniform(k4, (3 * H,), jnp.float32, -kr, kr),
            )
        layers.append(dirs)
    F = 2 * H
    kl = 1.0 / math.sqrt(F)
    heads = []
    for C in num_classes_list:
        key, k1, k2 = jax.random.split(key, 3)
        heads.append(dict(w_T=jax.random.uniform(k1, (F, C), jnp.float32, -kl, kl),
                          b=jax.random.uniform(k2, (C,), jnp.float32, -kl, kl)))
    return dict(layers=layers, heads=heads, H=H,
                num_classes_list=list(num_classes_list))


def _pad_gate_cols(w, H, Hp):
    """(..., 3H) -> (..., 3Hp): each gate block at a 128-aligned column offset."""
    parts = []
    for g in range(3):
        blk = w[..., g * H:(g + 1) * H]
        pad = [(0, 0)] * (w.ndim - 1) + [(0, Hp - H)]
        parts.append(jnp.pad(blk, pad))
    return jnp.concatenate(parts, axis=-1)


def _pad_bidir_rows(w, H, Hp):
    """(2H, X) rows [fwd|bwd] -> (2Hp, X) with rows placed at offsets 0 and Hp."""
    out = jnp.zeros((2 * Hp, w.shape[1]), w.dtype)
    out = out.at[:H].set(w[:H])
    out = out.at[Hp:Hp + H].set(w[H:2 * H])
    return out


def build_kernel_params(p):
    H = p["H"]
    Hp = max(128, _round_up(H, 128))
    layers = []
    for li, layer in enumerate(p["layers"]):
        entry = {"Hp": Hp}
        for dname, sfx in (("fwd", "f"), ("bwd", "b")):
            q = layer[dname]
            wih = _pad_gate_cols(q["w_ih_T"], H, Hp)             # (Din, 3Hp)
            if li > 0:
                wih = _pad_bidir_rows(wih, H, Hp)                # (2Hp, 3Hp)
            whh = jnp.zeros((Hp, 3 * Hp), jnp.float32).at[:H].set(
                _pad_gate_cols(q["w_hh_T"], H, Hp))
            b_ih, b_hh = q["b_ih"], q["b_hh"]
            bgi_log = jnp.concatenate([b_ih[:H] + b_hh[:H],
                                       b_ih[H:2 * H] + b_hh[H:2 * H],
                                       b_ih[2 * H:]], axis=0)    # (3H,)
            bgi = _pad_gate_cols(bgi_log[None, :], H, Hp)        # (1, 3Hp)
            bhn = jnp.zeros((1, Hp), jnp.float32).at[0, :H].set(b_hh[2 * H:])
            entry["wih_" + sfx] = wih.astype(jnp.bfloat16)
            entry["whh_" + sfx] = whh.astype(jnp.bfloat16)
            entry["bgi_" + sfx] = bgi
            entry["bhn_" + sfx] = bhn
        layers.append(entry)
    # fused heads: column-concatenate all heads; rows split into fwd/bwd halves.
    Ctot = sum(p["num_classes_list"])
    Cp = max(128, _round_up(Ctot, 128))
    w_f = jnp.zeros((Hp, Cp), jnp.float32)
    w_b = jnp.zeros((Hp, Cp), jnp.float32)
    b_all = jnp.zeros((1, Cp), jnp.float32)
    col = 0
    for hd in p["heads"]:
        wT = hd["w_T"]                       # (2H, C)
        C = wT.shape[1]
        w_f = w_f.at[:H, col:col + C].set(wT[:H])
        w_b = w_b.at[:H, col:col + C].set(wT[H:2 * H])
        b_all = b_all.at[0, col:col + C].set(hd["b"])
        col += C
    return dict(layers=layers, head_wf=w_f.astype(jnp.bfloat16),
                head_wb=w_b.astype(jnp.bfloat16), head_b=b_all,
                Hp=Hp, Cp=Cp, num_classes_list=list(p["num_classes_list"]))


# ----------------------------------------------------------------------------
# Pure-JAX reference (same bf16/f32 math, unpadded) for verification
# ----------------------------------------------------------------------------
def _ref_gru_dir(x, lens, q, reverse):
    T, B, _ = x.shape
    H = q["w_hh_T"].shape[0]
    wih = q["w_ih_T"].astype(jnp.bfloat16)
    whh = q["w_hh_T"].astype(jnp.bfloat16)
    b_ih, b_hh = q["b_ih"], q["b_hh"]

    def step(h, t):
        gi = jnp.dot(x[t].astype(jnp.bfloat16), wih,
                     preferred_element_type=jnp.float32) + b_ih
        gh = jnp.dot(h.astype(jnp.bfloat16), whh,
                     preferred_element_type=jnp.float32) + b_hh
        r = jax.nn.sigmoid(gi[:, :H] + gh[:, :H])
        z = jax.nn.sigmoid(gi[:, H:2 * H] + gh[:, H:2 * H])
        n = jnp.tanh(gi[:, 2 * H:] + r * gh[:, 2 * H:])
        h_new = (1.0 - z) * n + z * h
        h_new = jnp.where(t < lens, h_new, h)
        return h_new, h_new

    ts = jnp.arange(T)
    if reverse:
        ts = ts[::-1]
    _, ys = jax.lax.scan(step, jnp.zeros((B, H), jnp.float32), ts)
    return ys[::-1] if reverse else ys


def ref_forward(x_bct, lengths, p):
    lengths = np.asarray(lengths)
    t_eff = int(lengths.max())
    x = jnp.transpose(x_bct, (2, 0, 1))[:t_eff]
    T, B, _ = x.shape
    lens = jnp.asarray(lengths, jnp.int32).reshape(B, 1)
    h = x
    for layer in p["layers"]:
        fwd = _ref_gru_dir(h, lens, layer["fwd"], False)
        bwd = _ref_gru_dir(h, lens, layer["bwd"], True)
        h = jnp.concatenate([fwd, bwd], axis=-1)
    tids = jnp.arange(T)[:, None, None]
    hm = jnp.where(tids < lens[None], h, -1.0)
    outs = []
    for hd in p["heads"]:
        o = jnp.dot(hm.reshape(T * B, -1).astype(jnp.bfloat16),
                    hd["w_T"].astype(jnp.bfloat16),
                    preferred_element_type=jnp.float32) + hd["b"]
        outs.append(jnp.transpose(o.reshape(T, B, -1), (1, 2, 0)))
    return outs


# ----------------------------------------------------------------------------
if __name__ == "__main__":
    B, input_dim, T, H = 2, 16, 8, 32
    num_classes_list = [5, 7]
    lengths = np.array([8, 5], dtype=np.int64)      # max(lengths) == T

    key = jax.random.PRNGKey(0)
    kx, kp = jax.random.split(key)
    x = jax.random.normal(kx, (B, input_dim, T), jnp.float32)   # PyTorch (B, C, T)
    logical = init_params(kp, input_dim, H, num_classes_list, num_layers=2)
    kparams = build_kernel_params(logical)

    refs = ref_forward(x, lengths, logical)

    # (1) explicit small chunks: exercises the multi-chunk (pipelined) path
    outs = mt_rnn_dp_forward(x, lengths, kparams,
                             gru_time_chunk=4, head_row_chunk=16)
    outs = [jax.block_until_ready(o) for o in outs]
    for o, r, C in zip(outs, refs, num_classes_list):
        assert o.shape == (B, C, T), (o.shape, (B, C, T))
        np.testing.assert_allclose(np.asarray(o), np.asarray(r), rtol=3e-2, atol=3e-2)

    # (2) auto (VMEM-budget-derived) chunking
    outs2 = mt_rnn_dp_forward(x, lengths, kparams)
    outs2 = [jax.block_until_ready(o) for o in outs2]
    for o, r in zip(outs2, refs):
        np.testing.assert_allclose(np.asarray(o), np.asarray(r), rtol=3e-2, atol=3e-2)

    print("KERNEL_OK")
</pallas_src>

<mosaic_0001>
module attributes {stable_mosaic.version = 11 : i64} {
  func.func @kernel(%arg0: i32, %arg1: memref<32x16xbf16, #tpu.memory_space<vmem>>, %arg2: memref<32x16xbf16, #tpu.memory_space<vmem>>, %arg3: memref<8x1xi32, #tpu.memory_space<vmem>>, %arg4: memref<16x384xbf16, #tpu.memory_space<vmem>>, %arg5: memref<16x384xbf16, #tpu.memory_space<vmem>>, %arg6: memref<128x384xbf16, #tpu.memory_space<vmem>>, %arg7: memref<128x384xbf16, #tpu.memory_space<vmem>>, %arg8: memref<1x384xf32, #tpu.memory_space<vmem>>, %arg9: memref<1x384xf32, #tpu.memory_space<vmem>>, %arg10: memref<1x128xf32, #tpu.memory_space<vmem>>, %arg11: memref<1x128xf32, #tpu.memory_space<vmem>>, %arg12: memref<4x8x128xbf16, #tpu.memory_space<vmem>>, %arg13: memref<4x8x128xbf16, #tpu.memory_space<vmem>>, %arg14: memref<8x128xf32, #tpu.memory_space<vmem>>, %arg15: memref<8x128xf32, #tpu.memory_space<vmem>>, %arg16: memref<32x384xf32, #tpu.memory_space<vmem>>, %arg17: memref<32x384xf32, #tpu.memory_space<vmem>>) attributes {dimension_semantics = [#tpu.dimension_semantics<arbitrary>], iteration_bounds = array<i64: 2>, scalar_prefetch = 0 : i64, scratch_operands = 4 : i64, tpu.core_type = #tpu.core_type<tc>, window_params = [{transform_indices = @transform_0, window_bounds = array<i64: 32, 16>}, {transform_indices = @transform_1, window_bounds = array<i64: 32, 16>}, {pipeline_mode = #tpu.pipeline_mode<synchronous>, transform_indices = @transform_2, window_bounds = array<i64: 8, 1>}, {pipeline_mode = #tpu.pipeline_mode<synchronous>, transform_indices = @transform_3, window_bounds = array<i64: 16, 384>}, {pipeline_mode = #tpu.pipeline_mode<synchronous>, transform_indices = @transform_4, window_bounds = array<i64: 16, 384>}, {pipeline_mode = #tpu.pipeline_mode<synchronous>, transform_indices = @transform_5, window_bounds = array<i64: 128, 384>}, {pipeline_mode = #tpu.pipeline_mode<synchronous>, transform_indices = @transform_6, window_bounds = array<i64: 128, 384>}, {pipeline_mode = #tpu.pipeline_mode<synchronous>, transform_indices = @transform_7, window_bounds = array<i64: 1, 384>}, {pipeline_mode = #tpu.pipeline_mode<synchronous>, transform_indices = @transform_8, window_bounds = array<i64: 1, 384>}, {pipeline_mode = #tpu.pipeline_mode<synchronous>, transform_indices = @transform_9, window_bounds = array<i64: 1, 128>}, {pipeline_mode = #tpu.pipeline_mode<synchronous>, transform_indices = @transform_10, window_bounds = array<i64: 1, 128>}, {transform_indices = @transform_11, window_bounds = array<i64: 4, 8, 128>}, {transform_indices = @transform_12, window_bounds = array<i64: 4, 8, 128>}]} {
    %c0_i32 = arith.constant 0 : i32
    %0 = arith.cmpi eq, %arg0, %c0_i32 : i32
    %1 = arith.extui %0 : i1 to i32
    %c0_i32_0 = arith.constant 0 : i32
    %2 = arith.cmpi ne, %1, %c0_i32_0 : i32
    scf.if %2 {
      %cst_106 = arith.constant 0.000000e+00 : f32
      %389 = vector.broadcast %cst_106 : f32 to vector<8x128xf32>
      %c0_107 = arith.constant 0 : index
      %c0_108 = arith.constant 0 : index
      %390 = vector.load %arg14[%c0_107, %c0_108] : memref<8x128xf32, #tpu.memory_space<vmem>>, vector<8x128xf32>
      tpu.vector_store %arg14[%c0_107, %c0_108], %389 {strides = array<i32>} : memref<8x128xf32, #tpu.memory_space<vmem>>, vector<8x128xf32>,
      %cst_109 = arith.constant 0.000000e+00 : f32
      %391 = vector.broadcast %cst_109 : f32 to vector<8x128xf32>
      %c0_110 = arith.constant 0 : index
      %c0_111 = arith.constant 0 : index
      %392 = vector.load %arg15[%c0_110, %c0_111] : memref<8x128xf32, #tpu.memory_space<vmem>>, vector<8x128xf32>
      tpu.vector_store %arg15[%c0_110, %c0_111], %391 {strides = array<i32>} : memref<8x128xf32, #tpu.memory_space<vmem>>, vector<8x128xf32>,
    } else {
    }
    %c0 = arith.constant 0 : index
    %c0_1 = arith.constant 0 : index
    %3 = vector.load %arg1[%c0, %c0_1] : memref<32x16xbf16, #tpu.memory_space<vmem>>, vector<32x16xbf16>
    %c0_2 = arith.constant 0 : index
    %c0_3 = arith.constant 0 : index
    %4 = vector.load %arg4[%c0_2, %c0_3] : memref<16x384xbf16, #tpu.memory_space<vmem>>, vector<16x384xbf16>
    %cst = arith.constant dense<0.000000e+00> : vector<32x384xf32>
    %5 = tpu.matmul %3, %4, %cst {dimension_numbers = #tpu.dot_dimension_numbers<[1], [0], [0], [1], [0, 0, 1, 1], [], []>} : vector<32x16xbf16>, vector<16x384xbf16>, vector<32x384xf32> -> vector<32x384xf32>
    %c0_4 = arith.constant 0 : index
    %c0_5 = arith.constant 0 : index
    %6 = vector.load %arg8[%c0_4, %c0_5] : memref<1x384xf32, #tpu.memory_space<vmem>>, vector<1x384xf32>
    %7 = vector.broadcast %6 : vector<1x384xf32> to vector<32x384xf32>
    %8 = arith.addf %5, %7 : vector<32x384xf32>
    %c0_6 = arith.constant 0 : index
    %c0_7 = arith.constant 0 : index
    %9 = vector.load %arg16[%c0_6, %c0_7] : memref<32x384xf32, #tpu.memory_space<vmem>>, vector<32x384xf32>
    tpu.vector_store %arg16[%c0_6, %c0_7], %8 {strides = array<i32>} : memref<32x384xf32, #tpu.memory_space<vmem>>, vector<32x384xf32>,
    %c0_8 = arith.constant 0 : index
    %c0_9 = arith.constant 0 : index
    %10 = vector.load %arg2[%c0_8, %c0_9] : memref<32x16xbf16, #tpu.memory_space<vmem>>, vector<32x16xbf16>
    %c0_10 = arith.constant 0 : index
    %c0_11 = arith.constant 0 : index
    %11 = vector.load %arg5[%c0_10, %c0_11] : memref<16x384xbf16, #tpu.memory_space<vmem>>, vector<16x384xbf16>
    %cst_12 = arith.constant dense<0.000000e+00> : vector<32x384xf32>
    %12 = tpu.matmul %10, %11, %cst_12 {dimension_numbers = #tpu.dot_dimension_numbers<[1], [0], [0], [1], [0, 0, 1, 1], [], []>} : vector<32x16xbf16>, vector<16x384xbf16>, vector<32x384xf32> -> vector<32x384xf32>
    %c0_13 = arith.constant 0 : index
    %c0_14 = arith.constant 0 : index
    %13 = vector.load %arg9[%c0_13, %c0_14] : memref<1x384xf32, #tpu.memory_space<vmem>>, vector<1x384xf32>
    %14 = vector.broadcast %13 : vector<1x384xf32> to vector<32x384xf32>
    %15 = arith.addf %12, %14 : vector<32x384xf32>
    %c0_15 = arith.constant 0 : index
    %c0_16 = arith.constant 0 : index
    %16 = vector.load %arg17[%c0_15, %c0_16] : memref<32x384xf32, #tpu.memory_space<vmem>>, vector<32x384xf32>
    tpu.vector_store %arg17[%c0_15, %c0_16], %15 {strides = array<i32>} : memref<32x384xf32, #tpu.memory_space<vmem>>, vector<32x384xf32>,
    %c0_17 = arith.constant 0 : index
    %c0_18 = arith.constant 0 : index
    %17 = vector.load %arg6[%c0_17, %c0_18] : memref<128x384xbf16, #tpu.memory_space<vmem>>, vector<128x384xbf16>
    %c0_19 = arith.constant 0 : index
    %c0_20 = arith.constant 0 : index
    %18 = vector.load %arg7[%c0_19, %c0_20] : memref<128x384xbf16, #tpu.memory_space<vmem>>, vector<128x384xbf16>
    %c0_21 = arith.constant 0 : index
    %c0_22 = arith.constant 0 : index
    %19 = vector.load %arg10[%c0_21, %c0_22] : memref<1x128xf32, #tpu.memory_space<vmem>>, vector<1x128xf32>
    %20 = vector.shape_cast %19 : vector<1x128xf32> to vector<1x128xf32>
    %21 = vector.broadcast %20 : vector<1x128xf32> to vector<8x128xf32>
    %c0_23 = arith.constant 0 : index
    %c0_24 = arith.constant 0 : index
    %22 = vector.load %arg11[%c0_23, %c0_24] : memref<1x128xf32, #tpu.memory_space<vmem>>, vector<1x128xf32>
    %23 = vector.shape_cast %22 : vector<1x128xf32> to vector<1x128xf32>
    %24 = vector.broadcast %23 : vector<1x128xf32> to vector<8x128xf32>
    %c0_25 = arith.constant 0 : index
    %c0_26 = arith.constant 0 : index
    %25 = vector.load %arg3[%c0_25, %c0_26] : memref<8x1xi32, #tpu.memory_space<vmem>>, vector<8x1xi32>
    %c4_i32 = arith.constant 4 : i32
    %26 = arith.muli %arg0, %c4_i32 : i32
    %c1_i32 = arith.constant 1 : i32
    %27 = arith.subi %c1_i32, %arg0 : i32
    %c4_i32_27 = arith.constant 4 : i32
    %28 = arith.muli %27, %c4_i32_27 : i32
    %c0_28 = arith.constant 0 : index
    %c0_29 = arith.constant 0 : index
    %29 = vector.load %arg14[%c0_28, %c0_29] : memref<8x128xf32, #tpu.memory_space<vmem>>, vector<8x128xf32>
    %c0_30 = arith.constant 0 : index
    %c0_31 = arith.constant 0 : index
    %30 = vector.load %arg15[%c0_30, %c0_31] : memref<8x128xf32, #tpu.memory_space<vmem>>, vector<8x128xf32>
    %c0_i32_32 = arith.constant 0 : i32
    %c8_i32 = arith.constant 8 : i32
    %31 = arith.muli %c0_i32_32, %c8_i32 : i32
    %32 = tpu.assume_multiple %31, 8 : i32
    %33 = arith.index_cast %32 : i32 to index
    %c0_33 = arith.constant 0 : index
    %34 = vector.load %arg16[%33, %c0_33] : memref<32x384xf32, #tpu.memory_space<vmem>>, vector<8x384xf32>
    %35 = arith.truncf %29 : vector<8x128xf32> to vector<8x128xbf16>
    %cst_34 = arith.constant dense<0.000000e+00> : vector<8x384xf32>
    %36 = tpu.matmul %35, %17, %cst_34 {dimension_numbers = #tpu.dot_dimension_numbers<[1], [0], [0], [1], [0, 0, 1, 1], [], []>} : vector<8x128xbf16>, vector<128x384xbf16>, vector<8x384xf32> -> vector<8x384xf32>
    %37 = vector.extract_strided_slice %34 {offsets = [0, 0], sizes = [8, 128], strides = [1, 1]} : vector<8x384xf32> to vector<8x128xf32>
    %38 = vector.extract_strided_slice %36 {offsets = [0, 0], sizes = [8, 128], strides = [1, 1]} : vector<8x384xf32> to vector<8x128xf32>
    %39 = arith.addf %37, %38 : vector<8x128xf32>
    %40 = arith.negf %39 : vector<8x128xf32>
    %41 = math.exp %40 : vector<8x128xf32>
    %cst_35 = arith.constant 1.000000e+00 : f32
    %42 = vector.broadcast %cst_35 : f32 to vector<8x128xf32>
    %43 = arith.addf %42, %41 : vector<8x128xf32>
    %44 = arith.divf %42, %43 : vector<8x128xf32>
    %45 = vector.extract_strided_slice %34 {offsets = [0, 128], sizes = [8, 128], strides = [1, 1]} : vector<8x384xf32> to vector<8x128xf32>
    %46 = vector.extract_strided_slice %36 {offsets = [0, 128], sizes = [8, 128], strides = [1, 1]} : vector<8x384xf32> to vector<8x128xf32>
    %47 = arith.addf %45, %46 : vector<8x128xf32>
    %48 = arith.negf %47 : vector<8x128xf32>
    %49 = math.exp %48 : vector<8x128xf32>
    %cst_36 = arith.constant 1.000000e+00 : f32
    %50 = vector.broadcast %cst_36 : f32 to vector<8x128xf32>
    %51 = arith.addf %50, %49 : vector<8x128xf32>
    %52 = arith.divf %50, %51 : vector<8x128xf32>
    %53 = vector.extract_strided_slice %34 {offsets = [0, 256], sizes = [8, 128], strides = [1, 1]} : vector<8x384xf32> to vector<8x128xf32>
    %54 = vector.extract_strided_slice %36 {offsets = [0, 256], sizes = [8, 128], strides = [1, 1]} : vector<8x384xf32> to vector<8x128xf32>
    %55 = arith.addf %54, %21 : vector<8x128xf32>
    %56 = arith.mulf %44, %55 : vector<8x128xf32>
    %57 = arith.addf %53, %56 : vector<8x128xf32>
    %58 = math.tanh %57 : vector<8x128xf32>
    %cst_37 = arith.constant 1.000000e+00 : f32
    %59 = vector.broadcast %cst_37 : f32 to vector<8x128xf32>
    %60 = arith.subf %59, %52 : vector<8x128xf32>
    %61 = arith.mulf %60, %58 : vector<8x128xf32>
    %62 = arith.mulf %52, %29 : vector<8x128xf32>
    %63 = arith.addf %61, %62 : vector<8x128xf32>
    %64 = arith.addi %26, %c0_i32_32 : i32
    %65 = vector.broadcast %64 : i32 to vector<8x1xi32>
    %66 = arith.cmpi slt, %65, %25 : vector<8x1xi32>
    %67 = vector.shape_cast %66 : vector<8x1xi1> to vector<8x1xi1>
    %68 = vector.broadcast %67 : vector<8x1xi1> to vector<8x128xi1>
    %69 = arith.select %68, %63, %29 : vector<8x128xi1>, vector<8x128xf32>
    %c3_i32 = arith.constant 3 : i32
    %70 = arith.subi %c3_i32, %c0_i32_32 : i32
    %c8_i32_38 = arith.constant 8 : i32
    %71 = arith.muli %70, %c8_i32_38 : i32
    %72 = tpu.assume_multiple %71, 8 : i32
    %73 = arith.index_cast %72 : i32 to index
    %c0_39 = arith.constant 0 : index
    %74 = vector.load %arg17[%73, %c0_39] : memref<32x384xf32, #tpu.memory_space<vmem>>, vector<8x384xf32>
    %75 = arith.truncf %30 : vector<8x128xf32> to vector<8x128xbf16>
    %cst_40 = arith.constant dense<0.000000e+00> : vector<8x384xf32>
    %76 = tpu.matmul %75, %18, %cst_40 {dimension_numbers = #tpu.dot_dimension_numbers<[1], [0], [0], [1], [0, 0, 1, 1], [], []>} : vector<8x128xbf16>, vector<128x384xbf16>, vector<8x384xf32> -> vector<8x384xf32>
    %77 = vector.extract_strided_slice %74 {offsets = [0, 0], sizes = [8, 128], strides = [1, 1]} : vector<8x384xf32> to vector<8x128xf32>
    %78 = vector.extract_strided_slice %76 {offsets = [0, 0], sizes = [8, 128], strides = [1, 1]} : vector<8x384xf32> to vector<8x128xf32>
    %79 = arith.addf %77, %78 : vector<8x128xf32>
    %80 = arith.negf %79 : vector<8x128xf32>
    %81 = math.exp %80 : vector<8x128xf32>
    %cst_41 = arith.constant 1.000000e+00 : f32
    %82 = vector.broadcast %cst_41 : f32 to vector<8x128xf32>
    %83 = arith.addf %82, %81 : vector<8x128xf32>
    %84 = arith.divf %82, %83 : vector<8x128xf32>
    %85 = vector.extract_strided_slice %74 {offsets = [0, 128], sizes = [8, 128], strides = [1, 1]} : vector<8x384xf32> to vector<8x128xf32>
    %86 = vector.extract_strided_slice %76 {offsets = [0, 128], sizes = [8, 128], strides = [1, 1]} : vector<8x384xf32> to vector<8x128xf32>
    %87 = arith.addf %85, %86 : vector<8x128xf32>
    %88 = arith.negf %87 : vector<8x128xf32>
    %89 = math.exp %88 : vector<8x128xf32>
    %cst_42 = arith.constant 1.000000e+00 : f32
    %90 = vector.broadcast %cst_42 : f32 to vector<8x128xf32>
    %91 = arith.addf %90, %89 : vector<8x128xf32>
    %92 = arith.divf %90, %91 : vector<8x128xf32>
    %93 = vector.extract_strided_slice %74 {offsets = [0, 256], sizes = [8, 128], strides = [1, 1]} : vector<8x384xf32> to vector<8x128xf32>
    %94 = vector.extract_strided_slice %76 {offsets = [0, 256], sizes = [8, 128], strides = [1, 1]} : vector<8x384xf32> to vector<8x128xf32>
    %95 = arith.addf %94, %24 : vector<8x128xf32>
    %96 = arith.mulf %84, %95 : vector<8x128xf32>
    %97 = arith.addf %93, %96 : vector<8x128xf32>
    %98 = math.tanh %97 : vector<8x128xf32>
    %cst_43 = arith.constant 1.000000e+00 : f32
    %99 = vector.broadcast %cst_43 : f32 to vector<8x128xf32>
    %100 = arith.subf %99, %92 : vector<8x128xf32>
    %101 = arith.mulf %100, %98 : vector<8x128xf32>
    %102 = arith.mulf %92, %30 : vector<8x128xf32>
    %103 = arith.addf %101, %102 : vector<8x128xf32>
    %104 = arith.addi %28, %70 : i32
    %105 = vector.broadcast %104 : i32 to vector<8x1xi32>
    %106 = arith.cmpi slt, %105, %25 : vector<8x1xi32>
    %107 = vector.shape_cast %106 : vector<8x1xi1> to vector<8x1xi1>
    %108 = vector.broadcast %107 : vector<8x1xi1> to vector<8x128xi1>
    %109 = arith.select %108, %103, %30 : vector<8x128xi1>, vector<8x128xf32>
    %110 = arith.truncf %69 : vector<8x128xf32> to vector<8x128xbf16>
    %111 = arith.index_cast %c0_i32_32 : i32 to index
    %c0_44 = arith.constant 0 : index
    %c0_45 = arith.constant 0 : index
    %112 = vector.load %arg12[%111, %c0_44, %c0_45] : memref<4x8x128xbf16, #tpu.memory_space<vmem>>, vector<1x8x128xbf16>
    %113 = vector.shape_cast %112 : vector<1x8x128xbf16> to vector<8x128xbf16>
    %114 = vector.shape_cast %110 : vector<8x128xbf16> to vector<1x8x128xbf16>
    tpu.vector_store %arg12[%111, %c0_44, %c0_45], %114 {strides = array<i32>} : memref<4x8x128xbf16, #tpu.memory_space<vmem>>, vector<1x8x128xbf16>,
    %115 = arith.truncf %109 : vector<8x128xf32> to vector<8x128xbf16>
    %116 = arith.index_cast %70 : i32 to index
    %c0_46 = arith.constant 0 : index
    %c0_47 = arith.constant 0 : index
    %117 = vector.load %arg13[%116, %c0_46, %c0_47] : memref<4x8x128xbf16, #tpu.memory_space<vmem>>, vector<1x8x128xbf16>
    %118 = vector.shape_cast %117 : vector<1x8x128xbf16> to vector<8x128xbf16>
    %119 = vector.shape_cast %115 : vector<8x128xbf16> to vector<1x8x128xbf16>
    tpu.vector_store %arg13[%116, %c0_46, %c0_47], %119 {strides = array<i32>} : memref<4x8x128xbf16, #tpu.memory_space<vmem>>, vector<1x8x128xbf16>,
    %c1_i32_48 = arith.constant 1 : i32
    %c8_i32_49 = arith.constant 8 : i32
    %120 = arith.muli %c1_i32_48, %c8_i32_49 : i32
    %121 = tpu.assume_multiple %120, 8 : i32
    %122 = arith.index_cast %121 : i32 to index
    %c0_50 = arith.constant 0 : index
    %123 = vector.load %arg16[%122, %c0_50] : memref<32x384xf32, #tpu.memory_space<vmem>>, vector<8x384xf32>
    %124 = arith.truncf %69 : vector<8x128xf32> to vector<8x128xbf16>
    %cst_51 = arith.constant dense<0.000000e+00> : vector<8x384xf32>
    %125 = tpu.matmul %124, %17, %cst_51 {dimension_numbers = #tpu.dot_dimension_numbers<[1], [0], [0], [1], [0, 0, 1, 1], [], []>} : vector<8x128xbf16>, vector<128x384xbf16>, vector<8x384xf32> -> vector<8x384xf32>
    %126 = vector.extract_strided_slice %123 {offsets = [0, 0], sizes = [8, 128], strides = [1, 1]} : vector<8x384xf32> to vector<8x128xf32>
    %127 = vector.extract_strided_slice %125 {offsets = [0, 0], sizes = [8, 128], strides = [1, 1]} : vector<8x384xf32> to vector<8x128xf32>
    %128 = arith.addf %126, %127 : vector<8x128xf32>
    %129 = arith.negf %128 : vector<8x128xf32>
    %130 = math.exp %129 : vector<8x128xf32>
    %cst_52 = arith.constant 1.000000e+00 : f32
    %131 = vector.broadcast %cst_52 : f32 to vector<8x128xf32>
    %132 = arith.addf %131, %130 : vector<8x128xf32>
    %133 = arith.divf %131, %132 : vector<8x128xf32>
    %134 = vector.extract_strided_slice %123 {offsets = [0, 128], sizes = [8, 128], strides = [1, 1]} : vector<8x384xf32> to vector<8x128xf32>
    %135 = vector.extract_strided_slice %125 {offsets = [0, 128], sizes = [8, 128], strides = [1, 1]} : vector<8x384xf32> to vector<8x128xf32>
    %136 = arith.addf %134, %135 : vector<8x128xf32>
    %137 = arith.negf %136 : vector<8x128xf32>
    %138 = math.exp %137 : vector<8x128xf32>
    %cst_53 = arith.constant 1.000000e+00 : f32
    %139 = vector.broadcast %cst_53 : f32 to vector<8x128xf32>
    %140 = arith.addf %139, %138 : vector<8x128xf32>
    %141 = arith.divf %139, %140 : vector<8x128xf32>
    %142 = vector.extract_strided_slice %123 {offsets = [0, 256], sizes = [8, 128], strides = [1, 1]} : vector<8x384xf32> to vector<8x128xf32>
    %143 = vector.extract_strided_slice %125 {offsets = [0, 256], sizes = [8, 128], strides = [1, 1]} : vector<8x384xf32> to vector<8x128xf32>
    %144 = arith.addf %143, %21 : vector<8x128xf32>
    %145 = arith.mulf %133, %144 : vector<8x128xf32>
    %146 = arith.addf %142, %145 : vector<8x128xf32>
    %147 = math.tanh %146 : vector<8x128xf32>
    %cst_54 = arith.constant 1.000000e+00 : f32
    %148 = vector.broadcast %cst_54 : f32 to vector<8x128xf32>
    %149 = arith.subf %148, %141 : vector<8x128xf32>
    %150 = arith.mulf %149, %147 : vector<8x128xf32>
    %151 = arith.mulf %141, %69 : vector<8x128xf32>
    %152 = arith.addf %150, %151 : vector<8x128xf32>
    %153 = arith.addi %26, %c1_i32_48 : i32
    %154 = vector.broadcast %153 : i32 to vector<8x1xi32>
    %155 = arith.cmpi slt, %154, %25 : vector<8x1xi32>
    %156 = vector.shape_cast %155 : vector<8x1xi1> to vector<8x1xi1>
    %157 = vector.broadcast %156 : vector<8x1xi1> to vector<8x128xi1>
    %158 = arith.select %157, %152, %69 : vector<8x128xi1>, vector<8x128xf32>
    %c3_i32_55 = arith.constant 3 : i32
    %159 = arith.subi %c3_i32_55, %c1_i32_48 : i32
    %c8_i32_56 = arith.constant 8 : i32
    %160 = arith.muli %159, %c8_i32_56 : i32
    %161 = tpu.assume_multiple %160, 8 : i32
    %162 = arith.index_cast %161 : i32 to index
    %c0_57 = arith.constant 0 : index
    %163 = vector.load %arg17[%162, %c0_57] : memref<32x384xf32, #tpu.memory_space<vmem>>, vector<8x384xf32>
    %164 = arith.truncf %109 : vector<8x128xf32> to vector<8x128xbf16>
    %cst_58 = arith.constant dense<0.000000e+00> : vector<8x384xf32>
    %165 = tpu.matmul %164, %18, %cst_58 {dimension_numbers = #tpu.dot_dimension_numbers<[1], [0], [0], [1], [0, 0, 1, 1], [], []>} : vector<8x128xbf16>, vector<128x384xbf16>, vector<8x384xf32> -> vector<8x384xf32>
    %166 = vector.extract_strided_slice %163 {offsets = [0, 0], sizes = [8, 128], strides = [1, 1]} : vector<8x384xf32> to vector<8x128xf32>
    %167 = vector.extract_strided_slice %165 {offsets = [0, 0], sizes = [8, 128], strides = [1, 1]} : vector<8x384xf32> to vector<8x128xf32>
    %168 = arith.addf %166, %167 : vector<8x128xf32>
    %169 = arith.negf %168 : vector<8x128xf32>
    %170 = math.exp %169 : vector<8x128xf32>
    %cst_59 = arith.constant 1.000000e+00 : f32
    %171 = vector.broadcast %cst_59 : f32 to vector<8x128xf32>
    %172 = arith.addf %171, %170 : vector<8x128xf32>
    %173 = arith.divf %171, %172 : vector<8x128xf32>
    %174 = vector.extract_strided_slice %163 {offsets = [0, 128], sizes = [8, 128], strides = [1, 1]} : vector<8x384xf32> to vector<8x128xf32>
    %175 = vector.extract_strided_slice %165 {offsets = [0, 128], sizes = [8, 128], strides = [1, 1]} : vector<8x384xf32> to vector<8x128xf32>
    %176 = arith.addf %174, %175 : vector<8x128xf32>
    %177 = arith.negf %176 : vector<8x128xf32>
    %178 = math.exp %177 : vector<8x128xf32>
    %cst_60 = arith.constant 1.000000e+00 : f32
    %179 = vector.broadcast %cst_60 : f32 to vector<8x128xf32>
    %180 = arith.addf %179, %178 : vector<8x128xf32>
    %181 = arith.divf %179, %180 : vector<8x128xf32>
    %182 = vector.extract_strided_slice %163 {offsets = [0, 256], sizes = [8, 128], strides = [1, 1]} : vector<8x384xf32> to vector<8x128xf32>
    %183 = vector.extract_strided_slice %165 {offsets = [0, 256], sizes = [8, 128], strides = [1, 1]} : vector<8x384xf32> to vector<8x128xf32>
    %184 = arith.addf %183, %24 : vector<8x128xf32>
    %185 = arith.mulf %173, %184 : vector<8x128xf32>
    %186 = arith.addf %182, %185 : vector<8x128xf32>
    %187 = math.tanh %186 : vector<8x128xf32>
    %cst_61 = arith.constant 1.000000e+00 : f32
    %188 = vector.broadcast %cst_61 : f32 to vector<8x128xf32>
    %189 = arith.subf %188, %181 : vector<8x128xf32>
    %190 = arith.mulf %189, %187 : vector<8x128xf32>
    %191 = arith.mulf %181, %109 : vector<8x128xf32>
    %192 = arith.addf %190, %191 : vector<8x128xf32>
    %193 = arith.addi %28, %159 : i32
    %194 = vector.broadcast %193 : i32 to vector<8x1xi32>
    %195 = arith.cmpi slt, %194, %25 : vector<8x1xi32>
    %196 = vector.shape_cast %195 : vector<8x1xi1> to vector<8x1xi1>
    %197 = vector.broadcast %196 : vector<8x1xi1> to vector<8x128xi1>
    %198 = arith.select %197, %192, %109 : vector<8x128xi1>, vector<8x128xf32>
    %199 = arith.truncf %158 : vector<8x128xf32> to vector<8x128xbf16>
    %200 = arith.index_cast %c1_i32_48 : i32 to index
    %c0_62 = arith.constant 0 : index
    %c0_63 = arith.constant 0 : index
    %201 = vector.load %arg12[%200, %c0_62, %c0_63] : memref<4x8x128xbf16, #tpu.memory_space<vmem>>, vector<1x8x128xbf16>
    %202 = vector.shape_cast %201 : vector<1x8x128xbf16> to vector<8x128xbf16>
    %203 = vector.shape_cast %199 : vector<8x128xbf16> to vector<1x8x128xbf16>
    tpu.vector_store %arg12[%200, %c0_62, %c0_63], %203 {strides = array<i32>} : memref<4x8x128xbf16, #tpu.memory_space<vmem>>, vector<1x8x128xbf16>,
    %204 = arith.truncf %198 : vector<8x128xf32> to vector<8x128xbf16>
    %205 = arith.index_cast %159 : i32 to index
    %c0_64 = arith.constant 0 : index
    %c0_65 = arith.constant 0 : index
    %206 = vector.load %arg13[%205, %c0_64, %c0_65] : memref<4x8x128xbf16, #tpu.memory_space<vmem>>, vector<1x8x128xbf16>
    %207 = vector.shape_cast %206 : vector<1x8x128xbf16> to vector<8x128xbf16>
    %208 = vector.shape_cast %204 : vector<8x128xbf16> to vector<1x8x128xbf16>
    tpu.vector_store %arg13[%205, %c0_64, %c0_65], %208 {strides = array<i32>} : memref<4x8x128xbf16, #tpu.memory_space<vmem>>, vector<1x8x128xbf16>,
    %c2_i32 = arith.constant 2 : i32
    %c8_i32_66 = arith.constant 8 : i32
    %209 = arith.muli %c2_i32, %c8_i32_66 : i32
    %210 = tpu.assume_multiple %209, 8 : i32
    %211 = arith.index_cast %210 : i32 to index
    %c0_67 = arith.constant 0 : index
    %212 = vector.load %arg16[%211, %c0_67] : memref<32x384xf32, #tpu.memory_space<vmem>>, vector<8x384xf32>
    %213 = arith.truncf %158 : vector<8x128xf32> to vector<8x128xbf16>
    %cst_68 = arith.constant dense<0.000000e+00> : vector<8x384xf32>
    %214 = tpu.matmul %213, %17, %cst_68 {dimension_numbers = #tpu.dot_dimension_numbers<[1], [0], [0], [1], [0, 0, 1, 1], [], []>} : vector<8x128xbf16>, vector<128x384xbf16>, vector<8x384xf32> -> vector<8x384xf32>
    %215 = vector.extract_strided_slice %212 {offsets = [0, 0], sizes = [8, 128], strides = [1, 1]} : vector<8x384xf32> to vector<8x128xf32>
    %216 = vector.extract_strided_slice %214 {offsets = [0, 0], sizes = [8, 128], strides = [1, 1]} : vector<8x384xf32> to vector<8x128xf32>
    %217 = arith.addf %215, %216 : vector<8x128xf32>
    %218 = arith.negf %217 : vector<8x128xf32>
    %219 = math.exp %218 : vector<8x128xf32>
    %cst_69 = arith.constant 1.000000e+00 : f32
    %220 = vector.broadcast %cst_69 : f32 to vector<8x128xf32>
    %221 = arith.addf %220, %219 : vector<8x128xf32>
    %222 = arith.divf %220, %221 : vector<8x128xf32>
    %223 = vector.extract_strided_slice %212 {offsets = [0, 128], sizes = [8, 128], strides = [1, 1]} : vector<8x384xf32> to vector<8x128xf32>
    %224 = vector.extract_strided_slice %214 {offsets = [0, 128], sizes = [8, 128], strides = [1, 1]} : vector<8x384xf32> to vector<8x128xf32>
    %225 = arith.addf %223, %224 : vector<8x128xf32>
    %226 = arith.negf %225 : vector<8x128xf32>
    %227 = math.exp %226 : vector<8x128xf32>
    %cst_70 = arith.constant 1.000000e+00 : f32
    %228 = vector.broadcast %cst_70 : f32 to vector<8x128xf32>
    %229 = arith.addf %228, %227 : vector<8x128xf32>
    %230 = arith.divf %228, %229 : vector<8x128xf32>
    %231 = vector.extract_strided_slice %212 {offsets = [0, 256], sizes = [8, 128], strides = [1, 1]} : vector<8x384xf32> to vector<8x128xf32>
    %232 = vector.extract_strided_slice %214 {offsets = [0, 256], sizes = [8, 128], strides = [1, 1]} : vector<8x384xf32> to vector<8x128xf32>
    %233 = arith.addf %232, %21 : vector<8x128xf32>
    %234 = arith.mulf %222, %233 : vector<8x128xf32>
    %235 = arith.addf %231, %234 : vector<8x128xf32>
    %236 = math.tanh %235 : vector<8x128xf32>
    %cst_71 = arith.constant 1.000000e+00 : f32
    %237 = vector.broadcast %cst_71 : f32 to vector<8x128xf32>
    %238 = arith.subf %237, %230 : vector<8x128xf32>
    %239 = arith.mulf %238, %236 : vector<8x128xf32>
    %240 = arith.mulf %230, %158 : vector<8x128xf32>
    %241 = arith.addf %239, %240 : vector<8x128xf32>
    %242 = arith.addi %26, %c2_i32 : i32
    %243 = vector.broadcast %242 : i32 to vector<8x1xi32>
    %244 = arith.cmpi slt, %243, %25 : vector<8x1xi32>
    %245 = vector.shape_cast %244 : vector<8x1xi1> to vector<8x1xi1>
    %246 = vector.broadcast %245 : vector<8x1xi1> to vector<8x128xi1>
    %247 = arith.select %246, %241, %158 : vector<8x128xi1>, vector<8x128xf32>
    %c3_i32_72 = arith.constant 3 : i32
    %248 = arith.subi %c3_i32_72, %c2_i32 : i32
    %c8_i32_73 = arith.constant 8 : i32
    %249 = arith.muli %248, %c8_i32_73 : i32
    %250 = tpu.assume_multiple %249, 8 : i32
    %251 = arith.index_cast %250 : i32 to index
    %c0_74 = arith.constant 0 : index
    %252 = vector.load %arg17[%251, %c0_74] : memref<32x384xf32, #tpu.memory_space<vmem>>, vector<8x384xf32>
    %253 = arith.truncf %198 : vector<8x128xf32> to vector<8x128xbf16>
    %cst_75 = arith.constant dense<0.000000e+00> : vector<8x384xf32>
    %254 = tpu.matmul %253, %18, %cst_75 {dimension_numbers = #tpu.dot_dimension_numbers<[1], [0], [0], [1], [0, 0, 1, 1], [], []>} : vector<8x128xbf16>, vector<128x384xbf16>, vector<8x384xf32> -> vector<8x384xf32>
    %255 = vector.extract_strided_slice %252 {offsets = [0, 0], sizes = [8, 128], strides = [1, 1]} : vector<8x384xf32> to vector<8x128xf32>
    %256 = vector.extract_strided_slice %254 {offsets = [0, 0], sizes = [8, 128], strides = [1, 1]} : vector<8x384xf32> to vector<8x128xf32>
    %257 = arith.addf %255, %256 : vector<8x128xf32>
    %258 = arith.negf %257 : vector<8x128xf32>
    %259 = math.exp %258 : vector<8x128xf32>
    %cst_76 = arith.constant 1.000000e+00 : f32
    %260 = vector.broadcast %cst_76 : f32 to vector<8x128xf32>
    %261 = arith.addf %260, %259 : vector<8x128xf32>
    %262 = arith.divf %260, %261 : vector<8x128xf32>
    %263 = vector.extract_strided_slice %252 {offsets = [0, 128], sizes = [8, 128], strides = [1, 1]} : vector<8x384xf32> to vector<8x128xf32>
    %264 = vector.extract_strided_slice %254 {offsets = [0, 128], sizes = [8, 128], strides = [1, 1]} : vector<8x384xf32> to vector<8x128xf32>
    %265 = arith.addf %263, %264 : vector<8x128xf32>
    %266 = arith.negf %265 : vector<8x128xf32>
    %267 = math.exp %266 : vector<8x128xf32>
    %cst_77 = arith.constant 1.000000e+00 : f32
    %268 = vector.broadcast %cst_77 : f32 to vector<8x128xf32>
    %269 = arith.addf %268, %267 : vector<8x128xf32>
    %270 = arith.divf %268, %269 : vector<8x128xf32>
    %271 = vector.extract_strided_slice %252 {offsets = [0, 256], sizes = [8, 128], strides = [1, 1]} : vector<8x384xf32> to vector<8x128xf32>
    %272 = vector.extract_strided_slice %254 {offsets = [0, 256], sizes = [8, 128], strides = [1, 1]} : vector<8x384xf32> to vector<8x128xf32>
    %273 = arith.addf %272, %24 : vector<8x128xf32>
    %274 = arith.mulf %262, %273 : vector<8x128xf32>
    %275 = arith.addf %271, %274 : vector<8x128xf32>
    %276 = math.tanh %275 : vector<8x128xf32>
    %cst_78 = arith.constant 1.000000e+00 : f32
    %277 = vector.broadcast %cst_78 : f32 to vector<8x128xf32>
    %278 = arith.subf %277, %270 : vector<8x128xf32>
    %279 = arith.mulf %278, %276 : vector<8x128xf32>
    %280 = arith.mulf %270, %198 : vector<8x128xf32>
    %281 = arith.addf %279, %280 : vector<8x128xf32>
    %282 = arith.addi %28, %248 : i32
    %283 = vector.broadcast %282 : i32 to vector<8x1xi32>
    %284 = arith.cmpi slt, %283, %25 : vector<8x1xi32>
    %285 = vector.shape_cast %284 : vector<8x1xi1> to vector<8x1xi1>
    %286 = vector.broadcast %285 : vector<8x1xi1> to vector<8x128xi1>
    %287 = arith.select %286, %281, %198 : vector<8x128xi1>, vector<8x128xf32>
    %288 = arith.truncf %247 : vector<8x128xf32> to vector<8x128xbf16>
    %289 = arith.index_cast %c2_i32 : i32 to index
    %c0_79 = arith.constant 0 : index
    %c0_80 = arith.constant 0 : index
    %290 = vector.load %arg12[%289, %c0_79, %c0_80] : memref<4x8x128xbf16, #tpu.memory_space<vmem>>, vector<1x8x128xbf16>
    %291 = vector.shape_cast %290 : vector<1x8x128xbf16> to vector<8x128xbf16>
    %292 = vector.shape_cast %288 : vector<8x128xbf16> to vector<1x8x128xbf16>
    tpu.vector_store %arg12[%289, %c0_79, %c0_80], %292 {strides = array<i32>} : memref<4x8x128xbf16, #tpu.memory_space<vmem>>, vector<1x8x128xbf16>,
    %293 = arith.truncf %287 : vector<8x128xf32> to vector<8x128xbf16>
    %294 = arith.index_cast %248 : i32 to index
    %c0_81 = arith.constant 0 : index
    %c0_82 = arith.constant 0 : index
    %295 = vector.load %arg13[%294, %c0_81, %c0_82] : memref<4x8x128xbf16, #tpu.memory_space<vmem>>, vector<1x8x128xbf16>
    %296 = vector.shape_cast %295 : vector<1x8x128xbf16> to vector<8x128xbf16>
    %297 = vector.shape_cast %293 : vector<8x128xbf16> to vector<1x8x128xbf16>
    tpu.vector_store %arg13[%294, %c0_81, %c0_82], %297 {strides = array<i32>} : memref<4x8x128xbf16, #tpu.memory_space<vmem>>, vector<1x8x128xbf16>,
    %c3_i32_83 = arith.constant 3 : i32
    %c8_i32_84 = arith.constant 8 : i32
    %298 = arith.muli %c3_i32_83, %c8_i32_84 : i32
    %299 = tpu.assume_multiple %298, 8 : i32
    %300 = arith.index_cast %299 : i32 to index
    %c0_85 = arith.constant 0 : index
    %301 = vector.load %arg16[%300, %c0_85] : memref<32x384xf32, #tpu.memory_space<vmem>>, vector<8x384xf32>
    %302 = arith.truncf %247 : vector<8x128xf32> to vector<8x128xbf16>
    %cst_86 = arith.constant dense<0.000000e+00> : vector<8x384xf32>
    %303 = tpu.matmul %302, %17, %cst_86 {dimension_numbers = #tpu.dot_dimension_numbers<[1], [0], [0], [1], [0, 0, 1, 1], [], []>} : vector<8x128xbf16>, vector<128x384xbf16>, vector<8x384xf32> -> vector<8x384xf32>
    %304 = vector.extract_strided_slice %301 {offsets = [0, 0], sizes = [8, 128], strides = [1, 1]} : vector<8x384xf32> to vector<8x128xf32>
    %305 = vector.extract_strided_slice %303 {offsets = [0, 0], sizes = [8, 128], strides = [1, 1]} : vector<8x384xf32> to vector<8x128xf32>
    %306 = arith.addf %304, %305 : vector<8x128xf32>
    %307 = arith.negf %306 : vector<8x128xf32>
    %308 = math.exp %307 : vector<8x128xf32>
    %cst_87 = arith.constant 1.000000e+00 : f32
    %309 = vector.broadcast %cst_87 : f32 to vector<8x128xf32>
    %310 = arith.addf %309, %308 : vector<8x128xf32>
    %311 = arith.divf %309, %310 : vector<8x128xf32>
    %312 = vector.extract_strided_slice %301 {offsets = [0, 128], sizes = [8, 128], strides = [1, 1]} : vector<8x384xf32> to vector<8x128xf32>
    %313 = vector.extract_strided_slice %303 {offsets = [0, 128], sizes = [8, 128], strides = [1, 1]} : vector<8x384xf32> to vector<8x128xf32>
    %314 = arith.addf %312, %313 : vector<8x128xf32>
    %315 = arith.negf %314 : vector<8x128xf32>
    %316 = math.exp %315 : vector<8x128xf32>
    %cst_88 = arith.constant 1.000000e+00 : f32
    %317 = vector.broadcast %cst_88 : f32 to vector<8x128xf32>
    %318 = arith.addf %317, %316 : vector<8x128xf32>
    %319 = arith.divf %317, %318 : vector<8x128xf32>
    %320 = vector.extract_strided_slice %301 {offsets = [0, 256], sizes = [8, 128], strides = [1, 1]} : vector<8x384xf32> to vector<8x128xf32>
    %321 = vector.extract_strided_slice %303 {offsets = [0, 256], sizes = [8, 128], strides = [1, 1]} : vector<8x384xf32> to vector<8x128xf32>
    %322 = arith.addf %321, %21 : vector<8x128xf32>
    %323 = arith.mulf %311, %322 : vector<8x128xf32>
    %324 = arith.addf %320, %323 : vector<8x128xf32>
    %325 = math.tanh %324 : vector<8x128xf32>
    %cst_89 = arith.constant 1.000000e+00 : f32
    %326 = vector.broadcast %cst_89 : f32 to vector<8x128xf32>
    %327 = arith.subf %326, %319 : vector<8x128xf32>
    %328 = arith.mulf %327, %325 : vector<8x128xf32>
    %329 = arith.mulf %319, %247 : vector<8x128xf32>
    %330 = arith.addf %328, %329 : vector<8x128xf32>
    %331 = arith.addi %26, %c3_i32_83 : i32
    %332 = vector.broadcast %331 : i32 to vector<8x1xi32>
    %333 = arith.cmpi slt, %332, %25 : vector<8x1xi32>
    %334 = vector.shape_cast %333 : vector<8x1xi1> to vector<8x1xi1>
    %335 = vector.broadcast %334 : vector<8x1xi1> to vector<8x128xi1>
    %336 = arith.select %335, %330, %247 : vector<8x128xi1>, vector<8x128xf32>
    %c3_i32_90 = arith.constant 3 : i32
    %337 = arith.subi %c3_i32_90, %c3_i32_83 : i32
    %c8_i32_91 = arith.constant 8 : i32
    %338 = arith.muli %337, %c8_i32_91 : i32
    %339 = tpu.assume_multiple %338, 8 : i32
    %340 = arith.index_cast %339 : i32 to index
    %c0_92 = arith.constant 0 : index
    %341 = vector.load %arg17[%340, %c0_92] : memref<32x384xf32, #tpu.memory_space<vmem>>, vector<8x384xf32>
    %342 = arith.truncf %287 : vector<8x128xf32> to vector<8x128xbf16>
    %cst_93 = arith.constant dense<0.000000e+00> : vector<8x384xf32>
    %343 = tpu.matmul %342, %18, %cst_93 {dimension_numbers = #tpu.dot_dimension_numbers<[1], [0], [0], [1], [0, 0, 1, 1], [], []>} : vector<8x128xbf16>, vector<128x384xbf16>, vector<8x384xf32> -> vector<8x384xf32>
    %344 = vector.extract_strided_slice %341 {offsets = [0, 0], sizes = [8, 128], strides = [1, 1]} : vector<8x384xf32> to vector<8x128xf32>
    %345 = vector.extract_strided_slice %343 {offsets = [0, 0], sizes = [8, 128], strides = [1, 1]} : vector<8x384xf32> to vector<8x128xf32>
    %346 = arith.addf %344, %345 : vector<8x128xf32>
    %347 = arith.negf %346 : vector<8x128xf32>
    %348 = math.exp %347 : vector<8x128xf32>
    %cst_94 = arith.constant 1.000000e+00 : f32
    %349 = vector.broadcast %cst_94 : f32 to vector<8x128xf32>
    %350 = arith.addf %349, %348 : vector<8x128xf32>
    %351 = arith.divf %349, %350 : vector<8x128xf32>
    %352 = vector.extract_strided_slice %341 {offsets = [0, 128], sizes = [8, 128], strides = [1, 1]} : vector<8x384xf32> to vector<8x128xf32>
    %353 = vector.extract_strided_slice %343 {offsets = [0, 128], sizes = [8, 128], strides = [1, 1]} : vector<8x384xf32> to vector<8x128xf32>
    %354 = arith.addf %352, %353 : vector<8x128xf32>
    %355 = arith.negf %354 : vector<8x128xf32>
    %356 = math.exp %355 : vector<8x128xf32>
    %cst_95 = arith.constant 1.000000e+00 : f32
    %357 = vector.broadcast %cst_95 : f32 to vector<8x128xf32>
    %358 = arith.addf %357, %356 : vector<8x128xf32>
    %359 = arith.divf %357, %358 : vector<8x128xf32>
    %360 = vector.extract_strided_slice %341 {offsets = [0, 256], sizes = [8, 128], strides = [1, 1]} : vector<8x384xf32> to vector<8x128xf32>
    %361 = vector.extract_strided_slice %343 {offsets = [0, 256], sizes = [8, 128], strides = [1, 1]} : vector<8x384xf32> to vector<8x128xf32>
    %362 = arith.addf %361, %24 : vector<8x128xf32>
    %363 = arith.mulf %351, %362 : vector<8x128xf32>
    %364 = arith.addf %360, %363 : vector<8x128xf32>
    %365 = math.tanh %364 : vector<8x128xf32>
    %cst_96 = arith.constant 1.000000e+00 : f32
    %366 = vector.broadcast %cst_96 : f32 to vector<8x128xf32>
    %367 = arith.subf %366, %359 : vector<8x128xf32>
    %368 = arith.mulf %367, %365 : vector<8x128xf32>
    %369 = arith.mulf %359, %287 : vector<8x128xf32>
    %370 = arith.addf %368, %369 : vector<8x128xf32>
    %371 = arith.addi %28, %337 : i32
    %372 = vector.broadcast %371 : i32 to vector<8x1xi32>
    %373 = arith.cmpi slt, %372, %25 : vector<8x1xi32>
    %374 = vector.shape_cast %373 : vector<8x1xi1> to vector<8x1xi1>
    %375 = vector.broadcast %374 : vector<8x1xi1> to vector<8x128xi1>
    %376 = arith.select %375, %370, %287 : vector<8x128xi1>, vector<8x128xf32>
    %377 = arith.truncf %336 : vector<8x128xf32> to vector<8x128xbf16>
    %378 = arith.index_cast %c3_i32_83 : i32 to index
    %c0_97 = arith.constant 0 : index
    %c0_98 = arith.constant 0 : index
    %379 = vector.load %arg12[%378, %c0_97, %c0_98] : memref<4x8x128xbf16, #tpu.memory_space<vmem>>, vector<1x8x128xbf16>
    %380 = vector.shape_cast %379 : vector<1x8x128xbf16> to vector<8x128xbf16>
    %381 = vector.shape_cast %377 : vector<8x128xbf16> to vector<1x8x128xbf16>
    tpu.vector_store %arg12[%378, %c0_97, %c0_98], %381 {strides = array<i32>} : memref<4x8x128xbf16, #tpu.memory_space<vmem>>, vector<1x8x128xbf16>,
    %382 = arith.truncf %376 : vector<8x128xf32> to vector<8x128xbf16>
    %383 = arith.index_cast %337 : i32 to index
    %c0_99 = arith.constant 0 : index
    %c0_100 = arith.constant 0 : index
    %384 = vector.load %arg13[%383, %c0_99, %c0_100] : memref<4x8x128xbf16, #tpu.memory_space<vmem>>, vector<1x8x128xbf16>
    %385 = vector.shape_cast %384 : vector<1x8x128xbf16> to vector<8x128xbf16>
    %386 = vector.shape_cast %382 : vector<8x128xbf16> to vector<1x8x128xbf16>
    tpu.vector_store %arg13[%383, %c0_99, %c0_100], %386 {strides = array<i32>} : memref<4x8x128xbf16, #tpu.memory_space<vmem>>, vector<1x8x128xbf16>,
    %c4_i32_101 = arith.constant 4 : i32
    %c0_102 = arith.constant 0 : index
    %c0_103 = arith.constant 0 : index
    %387 = vector.load %arg14[%c0_102, %c0_103] : memref<8x128xf32, #tpu.memory_space<vmem>>, vector<8x128xf32>
    tpu.vector_store %arg14[%c0_102, %c0_103], %336 {strides = array<i32>} : memref<8x128xf32, #tpu.memory_space<vmem>>, vector<8x128xf32>,
    %c0_104 = arith.constant 0 : index
    %c0_105 = arith.constant 0 : index
    %388 = vector.load %arg15[%c0_104, %c0_105] : memref<8x128xf32, #tpu.memory_space<vmem>>, vector<8x128xf32>
    tpu.vector_store %arg15[%c0_104, %c0_105], %376 {strides = array<i32>} : memref<8x128xf32, #tpu.memory_space<vmem>>, vector<8x128xf32>,
    return
  }
  func.func @transform_0(%arg0: i32) -> (i32, i32) {
    %c0_i32 = arith.constant 0 : i32
    %c0_i32_0 = arith.constant 0 : i32
    return %arg0, %c0_i32 : i32, i32
  }
  func.func @transform_1(%arg0: i32) -> (i32, i32) {
    %c1_i32 = arith.constant 1 : i32
    %0 = arith.subi %c1_i32, %arg0 : i32
    %c0_i32 = arith.constant 0 : i32
    %c0_i32_0 = arith.constant 0 : i32
    return %0, %c0_i32 : i32, i32
  }
  func.func @transform_2(%arg0: i32) -> (i32, i32) {
    %c0_i32 = arith.constant 0 : i32
    %c0_i32_0 = arith.constant 0 : i32
    %c0_i32_1 = arith.constant 0 : i32
    return %c0_i32, %c0_i32_0 : i32, i32
  }
  func.func @transform_3(%arg0: i32) -> (i32, i32) {
    %c0_i32 = arith.constant 0 : i32
    %c0_i32_0 = arith.constant 0 : i32
    %c0_i32_1 = arith.constant 0 : i32
    return %c0_i32, %c0_i32_0 : i32, i32
  }
  func.func @transform_4(%arg0: i32) -> (i32, i32) {
    %c0_i32 = arith.constant 0 : i32
    %c0_i32_0 = arith.constant 0 : i32
    %c0_i32_1 = arith.constant 0 : i32
    return %c0_i32, %c0_i32_0 : i32, i32
  }
  func.func @transform_5(%arg0: i32) -> (i32, i32) {
    %c0_i32 = arith.constant 0 : i32
    %c0_i32_0 = arith.constant 0 : i32
    %c0_i32_1 = arith.constant 0 : i32
    return %c0_i32, %c0_i32_0 : i32, i32
  }
  func.func @transform_6(%arg0: i32) -> (i32, i32) {
    %c0_i32 = arith.constant 0 : i32
    %c0_i32_0 = arith.constant 0 : i32
    %c0_i32_1 = arith.constant 0 : i32
    return %c0_i32, %c0_i32_0 : i32, i32
  }
  func.func @transform_7(%arg0: i32) -> (i32, i32) {
    %c0_i32 = arith.constant 0 : i32
    %c0_i32_0 = arith.constant 0 : i32
    %c0_i32_1 = arith.constant 0 : i32
    return %c0_i32, %c0_i32_0 : i32, i32
  }
  func.func @transform_8(%arg0: i32) -> (i32, i32) {
    %c0_i32 = arith.constant 0 : i32
    %c0_i32_0 = arith.constant 0 : i32
    %c0_i32_1 = arith.constant 0 : i32
    return %c0_i32, %c0_i32_0 : i32, i32
  }
  func.func @transform_9(%arg0: i32) -> (i32, i32) {
    %c0_i32 = arith.constant 0 : i32
    %c0_i32_0 = arith.constant 0 : i32
    %c0_i32_1 = arith.constant 0 : i32
    return %c0_i32, %c0_i32_0 : i32, i32
  }
  func.func @transform_10(%arg0: i32) -> (i32, i32) {
    %c0_i32 = arith.constant 0 : i32
    %c0_i32_0 = arith.constant 0 : i32
    %c0_i32_1 = arith.constant 0 : i32
    return %c0_i32, %c0_i32_0 : i32, i32
  }
  func.func @transform_11(%arg0: i32) -> (i32, i32, i32) {
    %c0_i32 = arith.constant 0 : i32
    %c0_i32_0 = arith.constant 0 : i32
    %c0_i32_1 = arith.constant 0 : i32
    return %arg0, %c0_i32, %c0_i32_0 : i32, i32, i32
  }
  func.func @transform_12(%arg0: i32) -> (i32, i32, i32) {
    %c1_i32 = arith.constant 1 : i32
    %0 = arith.subi %c1_i32, %arg0 : i32
    %c0_i32 = arith.constant 0 : i32
    %c0_i32_0 = arith.constant 0 : i32
    %c0_i32_1 = arith.constant 0 : i32
    return %0, %c0_i32, %c0_i32_0 : i32, i32, i32
  }
}

</mosaic_0001>

<bundles_post_ra>
// kernel: tpu_custom_call.1
= control target key start
LH: loop header
LB: loop body
LE: loop exit
PB: predicated region body
PF: predicated region fallthrough
CT: control target
= control target key end

     0   :  { %s4115_s0 = inlined_call_operand.vmem [shape: bf16[64,16], index: 0, kind: input, shape index: {}]   ;;  %s4116_s1 = inlined_call_operand.vmem [shape: bf16[64,16], index: 1, kind: input, shape index: {}]   ;;  %s4117_s2 = inlined_call_operand.vmem [shape: s32[8,1], index: 2, kind: input, shape index: {}]   ;;  %s4118_s3 = inlined_call_operand.vmem [shape: bf16[16,384], index: 3, kind: input, shape index: {}]   ;;  %s4119_s4 = inlined_call_operand.vmem [shape: bf16[16,384], index: 4, kind: input, shape index: {}]   ;;  %s4120_s5 = inlined_call_operand.hbm [shape: bf16[128,384], index: 5, kind: input, shape index: {}]   ;;  %s4121_s6 = inlined_call_operand.hbm [shape: bf16[128,384], index: 6, kind: input, shape index: {}]   ;;  %s4122_s7 = inlined_call_operand.vmem [shape: f32[1,384], index: 7, kind: input, shape index: {}]   ;;  %s4123_s8 = inlined_call_operand.vmem [shape: f32[1,384], index: 8, kind: input, shape index: {}]   ;;  %s4124_s9 = inlined_call_operand.vmem [shape: f32[1,128], index: 9, kind: input, shape index: {}]   ;;  %s4125_s10 = inlined_call_operand.vmem [shape: f32[1,128], index: 10, kind: input, shape index: {}]   ;;  %s4126_s11 = inlined_call_operand.hbm [shape: bf16[8,8,128], index: 11, kind: output, shape index: {0}]   ;;  %s4127_s12 = inlined_call_operand.hbm [shape: bf16[8,8,128], index: 12, kind: output, shape index: {1}]  }
   0x1   :  { %4173 = sst [smem:[#allocation63_spill]] %s4120_s5 }
   0x2   :  { %4174 = sst [smem:[#allocation64_spill]] %s4127_s12 }
   0x3   :  { %18 = vsyncpa [#allocation7], 0 }
   0x4   :  { %19 = vsyncpa [#allocation10], 0 }
   0x5   :  { %20 = vsyncpa [#allocation8], 0 }
   0x6   :  { %22 = vsyncpa [#allocation8 + $0x1], 0 }
   0x7   :  { %23 = vsyncpa [#allocation13], 0 }
   0x8   :  { %25 = vsyncpa [#allocation13 + $0x1], 0  ;;  %s3231_s21 = smov 0   ;;  %s3233_s22 = smov 0  }
   0x9   :  { %s3235_s23 = smov 0   ;;  %s3237_s24 = smov 0  }
   0xa   :  { %s3239_s25 = smov 0   ;;  %s3241_s26 = smov 0  }
   0xb   :  { %s3243_s27 = smov 0  }
   0xc LB: > { %4175 = sst [smem:[#allocation18_spill]] %s3128_s21  ;;  %s3267_s28 = sadd.s32 4294967295, %s3152_s27   ;;  %s3152_s27 = sphi %s3243_s27, %s4286_s27   ;;  %s3148_s26 = sphi %s3241_s26, %s4290_s26   ;;  %s3144_s25 = sphi %s3239_s25, %s4294_s25   ;;  %s3140_s24 = sphi %s3237_s24, %s4293_s24   ;;  %s3136_s23 = sphi %s3235_s23, %s4288_s23   ;;  %s3132_s22 = sphi %s3233_s22, %s4292_s22   ;;  %s3128_s21 = sphi %s3231_s21, %s4291_s21  }
   0xd   : > { %4176 = sst [smem:[#allocation19_spill]] %s3136_s23  ;;  %s2313_s29 = sadd.s32 4294967294, %s3152_s27  }
   0xe   : > { %4177 = sst [smem:[#allocation20_spill]] %s3140_s24  ;;  %s3271_s30 = sadd.s32 1, %s3152_s27  }
   0xf   : > { %4178 = sst [smem:[#allocation21_spill]] %s3148_s26  ;;  %s281_s13 = sadd.s32 1, %s3148_s26 }
  0x10   : > { %4179 = sst [smem:[#allocation22_spill]] %s3152_s27  ;;  %s278_s14 = ssub.s32 %s3152_s27, %s3271_s30 }
  0x11   : > { %4180 = sst [smem:[#allocation23_spill]] %s3271_s30  ;;  %p291_p0 = scmp.ne.s32.totalorder %s3148_s26, %s3144_s25 }
  0x12   : > { %p279_p1 = scmp.eq.s32.totalorder %s278_s14, 0  ;;  %p292_p2 = scmp.eq.s32.totalorder %s3267_s28, 1 }
  0x13   : > { %p297_p3 = scmp.ne.s32.totalorder %s3144_s25, %s3140_s24  ;;  %p3281_p4 = scmp.eq.s32.totalorder %s2313_s29, 1 }
  0x14   : > { %s3286_s16 = scalar_select %p279_p1, %s3148_s26, %s281_s13  }
  0x15   : > { %p3290_p5 = por %p292_p2, %p291_p0  ;;  %p3296_p6 = por %p3281_p4, %p297_p3 }
  0x16   : > { %4182 = sst [smem:[#allocation24_spill]] %s3286_s16  ;;  %s304_s19 = ssub.s32 1, %s3152_s27 }
  0x17   : > { %s4183_s17 = scalar_select %p3290_p5, 1, 0 }
  0x18   : > { %s4184_s18 = scalar_select %p3296_p6, 1, 0 }
  0x19   : > { %s305_s20 = ssub.s32 1, %s3271_s30  ;;  %s309_s14 = sadd.s32 1, %s3136_s23 }
  0x1a   : > { %4185 = sst [smem:[#allocation25_spill]] %s4184_s18  ;;  %s306_s29 = ssub.s32 %s304_s19, %s305_s20 }
  0x1b   : > { %p307_p7 = scmp.eq.s32.totalorder %s306_s29, 0  ;;  %p319_p8 = scmp.ne.s32.totalorder %s3136_s23, %s3132_s22 }
  0x1c   : > { %p325_p9 = scmp.ne.s32.totalorder %s3132_s22, %s3128_s21  ;;  %p2314_p10 = scmp.ge.s32.totalorder %s3152_s27, 1 }
  0x1d   : > { %s3309_s13 = scalar_select %p307_p7, %s3136_s23, %s309_s14  }
  0x1e   : > { %p3313_p11 = por %p319_p8, %p292_p2  ;;  %p3319_p12 = por %p325_p9, %p3281_p4 }
  0x1f   : > { %4186 = sst [smem:[#allocation26_spill]] %s3309_s13  ;;  %p333_p13 = scmp.lt.s32.totalorder %s3152_s27, 3 }
  0x20   : > { %s4187_s16 = scalar_select %p3313_p11, 1, 0 }
  0x21   : > { %s4189_s26 = scalar_select %p3319_p12, 1, 0 }
  0x22   : > { %4188 = sst [smem:[#allocation27_spill]] %s4187_s16  ;;  %p4136_p1 = scmp.eq.s32.totalorder %s3267_s28, 0 }
  0x23   : > { %4190 = sst [smem:[#allocation28_spill]] %s4189_s26  ;;  %p3326_p3 = pnand %p2314_p10, %p333_p13 }
  0x24   : > { %s3154_s20 = smov [#allocation6]   ;;  %s3155_s14 = smov [#allocation9]  }
  0x25   : > { %s4191_s19 = scalar_select %p3326_p3, 1, 0 }
  0x26   : > { %s354_s29 = sshll.u32 %s3154_s20, 4  ;;  %p2692_p2 = pneg %p3326_p3  ;;  %s355_s29 = int_to_ptr.vmem [resolvable:$true] %s354_s29 }
  0x27   : > { %s367_s13 = sshll.u32 %s3155_s14, 4  ;;  %s4193_s5 = sld [smem:[#allocation63_spill]]  ;;  %s3338_s13 = int_to_ptr.vmem [resolvable:$true] %s367_s13 }
  0x28   : > { %p3334_p7 = pnand %p4136_p1, %p2692_p2 }
  0x2a   : > { %p2972_p8 = pneg %p3334_p7 }
  0x2d   : > { %s2970_s26 = scalar_lea.hbm %s4193_s5, 3072 }
  0x2e   : > { %p2971_p4 = scmp.ne.s32.totalorder %s4193_s5, %s2970_s26  ;;  %p2977_p13 = scmp.lt.u32.totalorder %s2970_s26, %s4193_s5 }
  0x30   : > { %p2973_p9 = pnand %p2972_p8, %p2971_p4 }
  0x32   : > { %p2974_p10 = pneg %p2973_p9 }
  0x34   : > { %p2979_p2 = pnand %p2977_p13, %p2974_p10 }
  0x36   : > { %2982 = shalt.err (!%p2979_p2)
}
  0x37   : > { %s2983_s14 = scalar_lea.vmem %s355_s29, 3072  ;;  %p2991_p6 = scmp.lt.s32.totalorder %s355_s29, %s355_s29 }
  0x38   : > { %p2984_p0 = scmp.ne.s32.totalorder %s355_s29, %s2983_s14  ;;  %p2992_p11 = scmp.lt.s32.totalorder %s2983_s14, %s2983_s14 }
  0x3a   : > { %p2986_p1 = pnand %p2984_p0, %p2972_p8  ;;  %p2993_p5 = por %p2992_p11, %p2991_p6 }
  0x3c   : > { %p2987_p12 = pneg %p2986_p1 }
  0x3e   : > { %p2994_p3 = pnand %p2993_p5, %p2987_p12 }
  0x40   : > { %2997 = shalt.err (!%p2994_p3)
}
  0x41   : > { %s3156_s21 = smov 192   ;;  %s3157_s23 = smov 12  }
  0x42   : > { %2695 = dma.hbm_to_vmem [thread:$0]  (!%p3334_p7), %s4193_s5, 3072, %s355_s29, [#allocation7], %s3156_s21, %s3156_s21, %s3157_s23  }
  0x43   : > { %s2998_s20 = scalar_lea.hbm %s4121_s6, 3072 }
  0x44   : > { %p2999_p0 = scmp.ne.s32.totalorder %s4121_s6, %s2998_s20  ;;  %p3005_p11 = scmp.lt.u32.totalorder %s2998_s20, %s4121_s6 }
  0x46   : > { %p3001_p5 = pnand %p2999_p0, %p2972_p8 }
  0x48   : > { %p3002_p6 = pneg %p3001_p5 }
  0x4a   : > { %p3007_p12 = pnand %p3005_p11, %p3002_p6 }
  0x4c   : > { %3010 = shalt.err (!%p3007_p12)
}
  0x4d   : > { %s3011_s29 = scalar_lea.vmem %s3338_s13, 3072  ;;  %p3019_p9 = scmp.lt.s32.totalorder %s3338_s13, %s3338_s13 }
  0x4e   : > { %p3012_p1 = scmp.ne.s32.totalorder %s3338_s13, %s3011_s29  ;;  %p3020_p10 = scmp.lt.s32.totalorder %s3011_s29, %s3011_s29 }
  0x50   : > { %p3014_p3 = pnand %p3012_p1, %p2972_p8  ;;  %p3021_p13 = por %p3020_p10, %p3019_p9 }
  0x52   : > { %p3015_p4 = pneg %p3014_p3 }
  0x54   : > { %p3022_p2 = pnand %p3021_p13, %p3015_p4 }
  0x56   : > { %3025 = shalt.err (!%p3022_p2)
}
  0x57   : > { %2698 = dma.hbm_to_vmem [thread:$0]  (!%p3334_p7), %s4121_s6, 3072, %s3338_s13, [#allocation10], %s3156_s21, %s3156_s21, %s3157_s23  }
  0x58   : > { %p4194_p0 = scmp.ne.s32.totalorder %s4191_s19, 0 }
  0x5a   : > { %415 = sbr.rel (%p4194_p0) target bundleno = 1265 (0x4f1), region = 64 }
  0x61   : > { %p4195_p5 = scmp.eq.s32.totalorder %s3267_s28, 0 }
  0x63   : > { %3111 = dma.done.wait (%p4195_p5), [#allocation7], 3072   ;;  %p4196_p8 = pmov %p4195_p5 }
  0x64   : > { %p4197_p6 = pmov %p4195_p5 }
  0x65   : > { %3113 = vsyncadd (%p4196_p8), [#allocation7], 4294964224 }
  0x66   : > { %3115 = dma.done.wait (%p4197_p6), [#allocation10], 3072   ;;  %p4198_p11 = pmov %p4195_p5 }
  0x67   : > { %s4145_s16 = sand.u32 1, %s3144_s25   ;;  %s4144_s13 = sand.u32 1, %s3132_s22  }
  0x68   : > { %3117 = vsyncadd (%p4198_p11), [#allocation10], 4294964224  ;;  %s2321_s19 = sshll.u32 %s4145_s16, 4  ;;  %s2322_s15 = sshll.u32 %s4144_s13, 4 }
  0x69   : > { %s3404_s21 = sshll.u32 %s3267_s28, 2  ;;  %s4146_s23 = ssub.s32 1, %s3267_s28 }
  0x6a   : > { %p473_p7 = scmp.lt.s32.totalorder %s3404_s21, 7  ;;  %s3410_s24 = sshll.u32 %s4146_s23, 2 }
  0x6b   : > { %p480_p12 = scmp.lt.s32.totalorder %s3410_s24, 7  ;;  %s3423_s5 = scalar_lea.vmem [#allocation11], %s2321_s19 }
  0x6c   : > { %s474_s26 = scalar_select %p473_p7, %s3404_s21, 7 }
  0x6d   : > { %s481_s30 = scalar_select %p480_p12, %s3410_s24, 7 }
  0x6e   : > { %s2324_s18 = sshll.u32 %s474_s26, 2  ;;  %s3425_s23 = scalar_lea.vmem [#allocation12], %s2322_s15 }
  0x6f   : > { %s476_s29 = scalar_lea.vmem %s4115_s0, %s2324_s18  ;;  %s2326_s12 = sshll.u32 %s481_s30, 2 }
  0x70   : > { %s3421_s16 = scalar_lea.vmem %s4116_s1, %s2326_s12  ;;  %p4199_p1 = scmp.ne.s32.totalorder %s3267_s28, 0 }
  0x71   : > { %v3158_v0 = vmov (!%p4199_p1), 0.0  }
  0x72   : > { %493 = sbr.rel (%p4199_p1) target bundleno = 121 (0x79), region = 76  ;;  %494 = vst [vmem:[#allocation2] sm:$0xff] (!%p4199_p1), %v3158_v0  ;;  %495 = vst [vmem:[#allocation3] sm:$0xff] (!%p4199_p1), %v3158_v0 }
  0x79 PF: > { %v2779_v1 = vld [vmem:[%s4118_s3 + $0x8] ss:$12 sps:$4 sm:$0xff]   ;;  %v2780_v2 = vld [vmem:[%s476_s29] sm:$0xff]   ;;  %vm547_vm0 = vcmask 130048   ;;  %v4153_v6 = vmov 0   ;;  %v4147_v16 = vmov 0.0   ;;  %v1161_v39 = vstv %s3404_s21 }
  0x7a   : > { %2508 = vmatprep.subr.bf16.mxu1 %v2779_v1  ;;  %v2781_v3 = vld [vmem:[%s476_s29 + $0x8] sm:$0xff]   ;;  %2510 = vmatprep.mubr.msk.bf16.mxu1 %vm547_vm0, %v2780_v2  ;;  %v2784_v5 = vld [vmem:[%s4119_s4 + $0x4] ss:$12 sps:$4 sm:$0xff]   ;;  %v3441_v7 = vld [vmem:[#allocation6 + $0x4] ss:$12 sps:$4 sm:$0xff]   ;;  %vm3161_vm1 = vmmov 0  }
  0x7b   : > { %2509 = vmatpush3.bf16.msra.mxu1 %v2779_v1  ;;  %v2782_v4 = vld [vmem:[%s4119_s4] ss:$12 sps:$4 sm:$0xff]   ;;  %586 = vmatprep.mubr.bf16.mxu0 %v4153_v6  ;;  %v2791_v8 = vld [vmem:[%s4118_s3 + $0x4] ss:$12 sps:$4 sm:$0xff]   ;;  %v2798_v12 = vld [vmem:[%s4119_s4 + $0x8] ss:$12 sps:$4 sm:$0xff]  }
  0x7c   : > { %2777 = vset.pattern.permute.xlu0 %v4153_v6  ;;  %2778 = vset.pattern.permute.xlu1 %v4153_v6  ;;  %v2794_v9 = vld [vmem:[%s4118_s3] ss:$12 sps:$4 sm:$0xff]   ;;  %v3454_v11 = vld [vmem:[#allocation6] ss:$12 sps:$4 sm:$0xff]   ;;  %v3464_v14 = vld [vmem:[#allocation6 + $0x18] ss:$12 sps:$4 sm:$0xff]  }
  0x7d   : > { %725 = vmatprep.subr.bf16.mxu1 %v2784_v5  ;;  %v2787_v10 = vld [vmem:[%s3421_s16] sm:$0xff]   ;;  %554 = vmatprep.subr.bf16.mxu0 %v2791_v8  ;;  %v3459_v13 = vld [vmem:[#allocation6 + $0x1c] ss:$12 sps:$4 sm:$0xff]   ;;  %v3477_v19 = vld [vmem:[#allocation6 + $0x4c] ss:$12 sps:$4 sm:$0xff]   ;;  %s1771_s20 = sadd.s32 2, %s3404_s21 }
  0x7e   : > { %2511 = vmatmul.mubr.msk.bf16.vlgmr.msra.gmra.mrb[0].mxu1 %vm547_vm0, %v2781_v3  ;;  %555 = vmatpush1.bf16.msra.mxu0 %v2794_v9  ;;  %v3467_v15 = vld [vmem:[#allocation6 + $0x34] ss:$12 sps:$4 sm:$0xff]   ;;  %v2808_v17 = vld [vmem:[%s3421_s16 + $0x8] sm:$0xff]   ;;  %4200 = vst [vmem:[#allocation29_spill] sm:$0xff] %v3477_v19  ;;  %v3486_v21 = vld [vmem:[#allocation6 + $0x64] ss:$12 sps:$4 sm:$0xff]   ;;  %v1772_v46 = vstv %s1771_s20 }
  0x7f   : > { %726 = vmatpush1.bf16.msra.mxu1 %v2782_v4  ;;  %757 = vmatprep.mubr.bf16.mxu1 %v4153_v6  ;;  %v3474_v18 = vld [vmem:[#allocation6 + $0x30] ss:$12 sps:$4 sm:$0xff]   ;;  %v3482_v20 = vld [vmem:[#allocation6 + $0x48] ss:$12 sps:$4 sm:$0xff]   ;;  %4202 = vst [vmem:[#allocation31_spill] sm:$0xff] %v3486_v21  ;;  %s1407_s16 = sadd.s32 3, %s3410_s24 }
  0x80   : > { %1058 = vmatprep.subr.bf16.mxu1 %v3441_v7  ;;  %2514 = vmatprep.subr.bf16.mxu0 %v2798_v12  ;;  %4201 = vst [vmem:[#allocation30_spill] sm:$0xff] %v3482_v20  ;;  %v3489_v22 = vld [vmem:[#allocation6 + $0x60] ss:$12 sps:$4 sm:$0xff]   ;;  %v3492_v23 = vld [vmem:[#allocation6 + $0x8] ss:$12 sps:$4 sm:$0xff]   ;;  %v1408_v40 = vstv %s1407_s16  ;;  %s2011_s15 = sadd.s32 3, %s3404_s21 }
  0x81   : > { %2333 = vmatmul.mubr.msk.bf16.vlgmr.msra.gmra.mrb[0].mxu0 %vm547_vm0, %v2780_v2  ;;  %4203 = vst [vmem:[#allocation32_spill] sm:$0xff] %v3489_v22  ;;  %v3495_v24 = vld [vmem:[#allocation6 + $0x7c] ss:$12 sps:$4 sm:$0xff]   ;;  %v3497_v25 = vld [vmem:[#allocation6 + $0x78] ss:$12 sps:$4 sm:$0xff]   ;;  %v3522_v32 = vld [vmem:[#allocation2] sm:$0xff]  ;;  %v2012_v51 = vstv %s2011_s15 }
  0x82   : > { %2515 = vmatpush3.bf16.msra.mxu0 %v2798_v12  ;;  %596 = vmatprep.mubr.bf16.mxu0 %v4153_v6  ;;  %4204 = vst [vmem:[#allocation33_spill] sm:$0xff] %v3495_v24  ;;  %4205 = vst [vmem:[#allocation34_spill] sm:$0xff] %v3497_v25  ;;  %v3502_v26 = vld [vmem:[#allocation6 + $0x20] ss:$12 sps:$4 sm:$0xff]   ;;  %v3511_v28 = vld [vmem:[#allocation6 + $0x90] ss:$12 sps:$4 sm:$0xff]   ;;  %v929_v35 = vpack.c.bf16 %v3522_v32, %v3522_v32 }
  0x83   : > { %2520 = vmatprep.subr.bf16.mxu0 %v4147_v16  ;;  %v3505_v27 = vld [vmem:[#allocation6 + $0x94] ss:$12 sps:$4 sm:$0xff]   ;;  %4207 = vst [vmem:[#allocation36_spill] sm:$0xff] %v3511_v28  ;;  %v3514_v29 = vld [vmem:[#allocation6 + $0x38] ss:$12 sps:$4 sm:$0xff]   ;;  %s1530_s14 = sadd.s32 1, %s3404_s21 }
  0x84   : > { %4206 = vst [vmem:[#allocation35_spill] sm:$0xff] %v3505_v27  ;;  %v3517_v30 = vld [vmem:[#allocation6 + $0xac] ss:$12 sps:$4 sm:$0xff]   ;;  %v3520_v31 = vld [vmem:[#allocation6 + $0xa8] ss:$12 sps:$4 sm:$0xff]   ;;  %s1648_s29 = sadd.s32 2, %s3410_s24 }
  0x85   : > { %4208 = vst [vmem:[#allocation37_spill] sm:$0xff] %v3517_v30  ;;  %4209 = vst [vmem:[#allocation38_spill] sm:$0xff] %v3520_v31  ;;  %v3526_v33 = vld [vmem:[#allocation6 + $0x50] ss:$12 sps:$4 sm:$0xff]   ;;  %v3535_v36 = vld [vmem:[#allocation9] ss:$12 sps:$4 sm:$0xff]  }
  0x86   : > { %2342 = vmatmul.mubr.msk.bf16.vlgmr.msra.gmra.mrb[4].mxu1 %vm547_vm0, %v2787_v10  ;;  %4210 = vst [vmem:[#allocation39_spill] sm:$0xff] %v3526_v33  ;;  %v3529_v34 = vld [vmem:[#allocation9 + $0x4] ss:$12 sps:$4 sm:$0xff]   ;;  %v3539_v37 = vld [vmem:[#allocation6 + $0x68] ss:$12 sps:$4 sm:$0xff]   ;;  %s1888_s12 = sadd.s32 1, %s3410_s24 }
  0x87   : > { %1059 = vmatpush1.bf16.msra.mxu1 %v3454_v11  ;;  %767 = vmatprep.mubr.bf16.mxu1 %v4153_v6  ;;  %4211 = vst [vmem:[#allocation40_spill] sm:$0xff] %v3529_v34  ;;  %4212 = vst [vmem:[#allocation41_spill] sm:$0xff] %v3539_v37  ;;  %v3542_v38 = vld [vmem:[#allocation9 + $0x1c] ss:$12 sps:$4 sm:$0xff]   ;;  %v3550_v41 = vld [vmem:[%s4117_s2] sm:$0xff]  ;;  %s2428_s13 = sshll.u32 %s3267_s28, 8 }
  0x88   : > { %1060 = vmatprep.subr.bf16.mxu1 %v3459_v13  ;;  %v3553_v42 = vld [vmem:[#allocation9 + $0x18] ss:$12 sps:$4 sm:$0xff]   ;;  %v3556_v43 = vld [vmem:[#allocation6 + $0x80] ss:$12 sps:$4 sm:$0xff]   ;;  %vm1162_vm2 = vcmp.lt.s32.totalorder %v1161_v39, %v3550_v41  ;;  %vm1409_vm3 = vcmp.lt.s32.totalorder %v1408_v40, %v3550_v41  ;;  %v3569_v48 = vld [vmem:[#allocation9 + $0x30] ss:$12 sps:$4 sm:$0xff]   ;;  %vm1773_vm4 = vcmp.lt.s32.totalorder %v1772_v46, %v3550_v41  ;;  %vm2013_vm5 = vcmp.lt.s32.totalorder %v2012_v51, %v3550_v41  ;;  %s4007_s18 = scalar_lea.hbm %s4126_s11, %s2428_s13 }
  0x89   : > { %2334 = vmatmul.mubr.msk.bf16.gmra.mrb[4].mxu0 %vm547_vm0, %v2781_v3  ;;  %4213 = vst [vmem:[#allocation42_spill] sm:$0xff] %v3556_v43  ;;  %v3561_v44 = vld [vmem:[#allocation9 + $0x34] ss:$12 sps:$4 sm:$0xff]   ;;  %v1163_v45 = vsel %vm1162_vm2, 1, %v4153_v6  ;;  %v1410_v47 = vsel %vm1409_vm3, 1, %v4153_v6  ;;  %v1774_v52 = vsel %vm1773_vm4, 1, %v4153_v6  ;;  %v1649_v46 = vstv %s1648_s29 }
  0x8a   : > { %2516 = vmatprep.mubr.msk.bf16.mxu0 %vm547_vm0, %v2787_v10  ;;  %1165 = vperm.xlu0 %2777, %v1163_v45   ;;  %v3572_v49 = vld [vmem:[#allocation6 + $0x98] ss:$12 sps:$4 sm:$0xff]   ;;  %v3581_v53 = vld [vmem:[#allocation9 + $0x48] ss:$12 sps:$4 sm:$0xff]   ;;  %v3584_v54 = vld [vmem:[#allocation6 + $0xb0] ss:$12 sps:$4 sm:$0xff]   ;;  %v1531_v45 = vstv %s1530_s14  ;;  %vm1650_vm7 = vcmp.lt.s32.totalorder %v1649_v46, %v3550_v41 }
  0x8b   : > { %1061 = vmatpush1.bf16.msra.mxu1 %v3464_v14  ;;  %4214 = vst [vmem:[#allocation43_spill] sm:$0xff] %v3572_v49  ;;  %v3576_v50 = vld [vmem:[#allocation9 + $0x4c] ss:$12 sps:$4 sm:$0xff]   ;;  %4215 = vst [vmem:[#allocation44_spill] sm:$0xff] %v3584_v54  ;;  %v3588_v55 = vld [vmem:[#allocation9 + $0x64] ss:$12 sps:$4 sm:$0xff]   ;;  %vm1532_vm6 = vcmp.lt.s32.totalorder %v1531_v45, %v3550_v41 }
  0x8c   : > { %1062 = vmatprep.subr.bf16.mxu1 %v3467_v15  ;;  %v2014_v56 = vsel %vm2013_vm5, 1, %v4153_v6  ;;  %v3593_v57 = vld [vmem:[#allocation9 + $0x60] ss:$12 sps:$4 sm:$0xff]   ;;  %v3596_v58 = vld [vmem:[#allocation9 + $0x8] ss:$12 sps:$4 sm:$0xff]   ;;  %v3627_v3 = vld [vmem:[#allocation3] sm:$0xff] }
  0x8d   : > { %v3599_v59 = vld [vmem:[#allocation9 + $0x7c] ss:$12 sps:$4 sm:$0xff]   ;;  %v3603_v60 = vld [vmem:[#allocation9 + $0x78] ss:$12 sps:$4 sm:$0xff]   ;;  %v3606_v61 = vld [vmem:[#allocation9 + $0x20] ss:$12 sps:$4 sm:$0xff]   ;;  %v1175_v5 = vpack.c.bf16 %v3627_v3, %v3627_v3 }
  0x8e   : > { %2343 = vmatmul.mubr.msk.bf16.gmra.mrb[8].mxu1 %vm547_vm0, %v2808_v17  ;;  %1412 = vperm.xlu0 %2777, %v1410_v47   ;;  %v3609_v62 = vld [vmem:[#allocation9 + $0x94] ss:$12 sps:$4 sm:$0xff]   ;;  %v3615_v63 = vld [vmem:[#allocation9 + $0x90] ss:$12 sps:$4 sm:$0xff]   ;;  %v3618_v0 = vld [vmem:[#allocation9 + $0x38] ss:$12 sps:$4 sm:$0xff]  }
  0x8f   : > { %1063 = vmatpush1.bf16.msra.mxu1 %v3474_v18  ;;  %1090 = vmatprep.mubr.bf16.mxu1 %v4153_v6  ;;  %v3621_v1 = vld [vmem:[#allocation9 + $0xac] ss:$12 sps:$4 sm:$0xff]   ;;  %v3625_v2 = vld [vmem:[#allocation9 + $0xa8] ss:$12 sps:$4 sm:$0xff]   ;;  %v3630_v4 = vld [vmem:[#allocation9 + $0x50] ss:$12 sps:$4 sm:$0xff]  }
  0x90   : > { %1064 = vmatprep.subr.bf16.mxu1 %v3477_v19  ;;  %v3638_v8 = vld [vmem:[#allocation9 + $0x68] ss:$12 sps:$4 sm:$0xff]   ;;  %v3643_v9 = vld [vmem:[#allocation9 + $0x80] ss:$12 sps:$4 sm:$0xff]   ;;  %v3650_v10 = vld [vmem:[#allocation9 + $0x98] ss:$12 sps:$4 sm:$0xff]  }
  0x91   : > { %2517 = vmatmul.mubr.msk.bf16.vlgmr.msra.gmra.mrb[8].mxu0 %vm547_vm0, %v2808_v17  ;;  %v3656_v12 = vld [vmem:[#allocation9 + $0xb0] ss:$12 sps:$4 sm:$0xff]   ;;  %v506_v17 = vlaneseq  ;;  %v1533_v51 = vsel %vm1532_vm6, 1, %v4153_v6  ;;  %s2162_s19 = sshll.u32 %s3423_s5, 4  ;;  %s4270_s14 = sand.u32 1, %s3144_s25   ;;  %s4009_s19 = int_to_ptr.vmem [resolvable:$true] %s2162_s19 }
  0x92   : > { %2521 = vmatpush3.bf16.msra.mxu0 %v3492_v23  ;;  %2536 = vmatprep.mubr.msk.bf16.mxu0 %vm3161_vm1, %v4147_v16  ;;  %v504_v40 = vld [vmem:[%s4122_s7] sm:$0x7]  ;;  %s4014_s29 = scalar_lea.sflag [#allocation8], %s4270_s14  ;;  %p4271_p4 = scmp.ne.s32.totalorder %s4183_s17, 0 }
  0x93   : > { %1065 = vmatpush1.bf16.msra.mxu1 %v3482_v20  ;;  %2522 = vmatprep.subr.bf16.mxu0 %v4147_v16  ;;  %v676_v45 = vld [vmem:[%s4123_s8] sm:$0x7]  ;;  %s3162_s21 = smov [#allocation11]  }
  0x94   : > { %1066 = vmatprep.subr.bf16.mxu1 %v3486_v21  ;;  %1776 = vperm.xlu0 %2777, %v1774_v52   ;;  %v1889_v52 = vstv %s1888_s12  ;;  %s3026_s12 = scalar_lea.vmem %s4009_s19, 256  ;;  %s3030_s27 = sshll.u32 %s3162_s21, 4  ;;  %s3031_s27 = int_to_ptr.vmem [resolvable:$false] %s3030_s27 }
  0x95   : > { %1535 = vperm.xlu1 %2778, %v1533_v51   ;;  %vm1890_vm8 = vcmp.lt.s32.totalorder %v1889_v52, %v3550_v41  ;;  %v2128_v51 = vstv %s3410_s24  ;;  %p3027_p3 = scmp.ne.s32.totalorder %s4009_s19, %s3026_s12  ;;  %s3032_s24 = scalar_lea.vmem %s3031_s27, 512 }
  0x96   : > { %2523 = vmatpush3.bf16.msra.mxu0 %v3502_v26  ;;  %vm2129_vm9 = vcmp.lt.s32.totalorder %v2128_v51, %v3550_v41  ;;  %p3033_p13 = scmp.lt.s32.totalorder %s4009_s19, %s3031_s27  ;;  %p3034_p2 = scmp.lt.s32.totalorder %s3032_s24, %s3026_s12 }
  0x97   : > { %1067 = vmatpush1.bf16.msra.mxu1 %v3489_v22  ;;  %2524 = vmatprep.subr.bf16.mxu0 %v4147_v16  ;;  %p3028_p9 = pnand %p3027_p3, %p4271_p4 }
  0x98   : > { %1068 = vmatprep.subr.bf16.mxu1 %v3495_v24  ;;  %2016 = vperm.xlu0 %2777, %v2014_v56   ;;  %p3035_p0 = por %p3034_p2, %p3033_p13 }
  0x99   : > { %p3029_p10 = pneg %p3028_p9 }
  0x9a   : > { %2525 = vmatpush3.bf16.msra.mxu0 %v3514_v29 }
  0x9b   : > { %1069 = vmatpush1.bf16.msra.mxu1 %v3497_v25  ;;  %2526 = vmatprep.subr.bf16.mxu0 %v4147_v16  ;;  %p3036_p5 = pnand %p3035_p0, %p3029_p10 }
  0x9c   : > { %1070 = vmatprep.subr.bf16.mxu1 %v3505_v27 }
  0x9e   : > { %2527 = vmatpush3.bf16.msra.mxu0 %v3526_v33 }
  0x9f   : > { %1071 = vmatpush1.bf16.msra.mxu1 %v3511_v28  ;;  %2528 = vmatprep.subr.bf16.mxu0 %v4147_v16 }
  0xa0   : > { %1072 = vmatprep.subr.bf16.mxu1 %v3517_v30 }
  0xa2   : > { %2529 = vmatpush3.bf16.msra.mxu0 %v3539_v37 }
  0xa3   : > { %1073 = vmatpush1.bf16.msra.mxu1 %v3520_v31  ;;  %2530 = vmatprep.subr.bf16.mxu0 %v4147_v16 }
  0xa4   : > { %1304 = vmatprep.subr.bf16.mxu1 %v3529_v34 }
  0xa6   : > { %1091 = vmatmul.mubr.bf16.vlgmr.msra.gmra.mrb[12].mxu1 %v929_v35  ;;  %2531 = vmatpush3.bf16.msra.mxu0 %v3556_v43 }
  0xa7   : > { %1305 = vmatpush1.bf16.msra.mxu1 %v3535_v36  ;;  %1336 = vmatprep.mubr.bf16.mxu1 %v4153_v6 }
  0xa8   : > { %1306 = vmatprep.subr.bf16.mxu1 %v3542_v38  ;;  %2532 = vmatprep.subr.bf16.mxu0 %v4147_v16 }
  0xaa   : > { %2533 = vmatpush3.bf16.msra.mxu0 %v3572_v49 }
  0xab   : > { %1307 = vmatpush1.bf16.msra.mxu1 %v3553_v42  ;;  %2534 = vmatprep.subr.bf16.mxu0 %v4147_v16 }
  0xac   : > { %1308 = vmatprep.subr.bf16.mxu1 %v3561_v44 }
  0xae   : > { %2535 = vmatpush3.bf16.msra.mxu0 %v3584_v54 }
  0xaf   : > { %1309 = vmatpush1.bf16.msra.mxu1 %v3569_v48  ;;  %2540 = vmatprep.subr.bf16.mxu0 %v4147_v16 }
  0xb0   : > { %1310 = vmatprep.subr.bf16.mxu1 %v3576_v50 }
  0xb1   : > { %2537 = vmatmul.mubr.bf16.vlgmr.msra.gmra.mrb[12].mxu0 %v929_v35  ;;  %v3691_v35 = vshrl.u32 %v506_v17, 7 }
  0xb2   : > { %2541 = vmatpush3.bf16.msra.mxu0 %v3596_v58  ;;  %2556 = vmatprep.mubr.msk.bf16.mxu0 %vm3161_vm1, %v4147_v16 }
  0xb3   : > { %1311 = vmatpush1.bf16.msra.mxu1 %v3581_v53  ;;  %2542 = vmatprep.subr.bf16.mxu0 %v4147_v16  ;;  %v4150_v39 = vsub.s32 2, %v3691_v35  ;;  %v512_v46 = vsub.s32 1, %v3691_v35 }
  0xb4   : > { %1312 = vmatprep.subr.bf16.mxu1 %v3588_v55 }
  0xb5   : > { %v3702_v47 = vrot.slane %v504_v40, %v4150_v39  ;;  %v3730_v52 = vrot.slane %v676_v45, %v512_v46 }
  0xb6   : > { %2543 = vmatpush3.bf16.msra.mxu0 %v3606_v61 }
  0xb7   : > { %1313 = vmatpush1.bf16.msra.mxu1 %v3593_v57  ;;  %2544 = vmatprep.subr.bf16.mxu0 %v4147_v16 }
  0xb8   : > { %1314 = vmatprep.subr.bf16.mxu1 %v3599_v59 }
  0xba   : > { %2545 = vmatpush3.bf16.msra.mxu0 %v3618_v0 }
  0xbb   : > { %1315 = vmatpush1.bf16.msra.mxu1 %v3603_v60  ;;  %2546 = vmatprep.subr.bf16.mxu0 %v4147_v16 }
  0xbc   : > { %1316 = vmatprep.subr.bf16.mxu1 %v3609_v62 }
  0xbe   : > { %2547 = vmatpush3.bf16.msra.mxu0 %v3630_v4 }
  0xbf   : > { %1317 = vmatpush1.bf16.msra.mxu1 %v3615_v63  ;;  %2548 = vmatprep.subr.bf16.mxu0 %v4147_v16 }
  0xc0   : > { %1318 = vmatprep.subr.bf16.mxu1 %v3621_v1 }
  0xc2   : > { %2549 = vmatpush3.bf16.msra.mxu0 %v3638_v8 }
  0xc3   : > { %1319 = vmatpush1.bf16.msra.mxu1 %v3625_v2  ;;  %2550 = vmatprep.subr.bf16.mxu0 %v4147_v16 }
  0xc4   : > { %1427 = vmatprep.subr.bf16.mxu1 %v3441_v7 }
  0xc6   : > { %1337 = vmatmul.mubr.bf16.vlgmr.msra.gmra.mrb[16].mxu1 %v1175_v5  ;;  %2551 = vmatpush3.bf16.msra.mxu0 %v3643_v9 }
  0xc7   : > { %1428 = vmatpush1.bf16.msra.mxu1 %v3454_v11  ;;  %1459 = vmatprep.mubr.bf16.mxu1 %v4153_v6 }
  0xc8   : > { %1429 = vmatprep.subr.bf16.mxu1 %v3459_v13  ;;  %2552 = vmatprep.subr.bf16.mxu0 %v4147_v16 }
  0xca   : > { %2553 = vmatpush3.bf16.msra.mxu0 %v3650_v10 }
  0xcb   : > { %1430 = vmatpush1.bf16.msra.mxu1 %v3464_v14  ;;  %2554 = vmatprep.subr.bf16.mxu0 %v4147_v16 }
  0xcc   : > { %1431 = vmatprep.subr.bf16.mxu1 %v3467_v15 }
  0xce   : > { %2555 = vmatpush3.bf16.msra.mxu0 %v3656_v12 }
  0xcf   : > { %1432 = vmatpush1.bf16.msra.mxu1 %v3474_v18  ;;  %2560 = vmatprep.subr.bf16.mxu0 %v4147_v16 }
  0xd0   : > { %1433 = vmatprep.subr.bf16.mxu1 %v3477_v19 }
  0xd1   : > { %2557 = vmatmul.mubr.bf16.vlgmr.msra.gmra.mrb[16].mxu0 %v1175_v5  ;;  %v1651_v5 = vsel %vm1650_vm7, 1, %v4153_v6 }
  0xd2   : > { %2561 = vmatpush3.bf16.msra.mxu0 %v3492_v23  ;;  %2576 = vmatprep.mubr.msk.bf16.mxu0 %vm3161_vm1, %v4147_v16 }
  0xd3   : > { %1434 = vmatpush1.bf16.msra.mxu1 %v3482_v20  ;;  %2562 = vmatprep.subr.bf16.mxu0 %v4147_v16 }
  0xd4   : > { %1435 = vmatprep.subr.bf16.mxu1 %v3486_v21  ;;  %1653 = vperm.xlu1 %2778, %v1651_v5  }
  0xd6   : > { %2563 = vmatpush3.bf16.msra.mxu0 %v3502_v26 }
  0xd7   : > { %1436 = vmatpush1.bf16.msra.mxu1 %v3489_v22  ;;  %2564 = vmatprep.subr.bf16.mxu0 %v4147_v16 }
  0xd8   : > { %1437 = vmatprep.subr.bf16.mxu1 %v3495_v24 }
  0xda   : > { %2565 = vmatpush3.bf16.msra.mxu0 %v3514_v29 }
  0xdb   : > { %1438 = vmatpush1.bf16.msra.mxu1 %v3497_v25  ;;  %2566 = vmatprep.subr.bf16.mxu0 %v4147_v16 }
  0xdc   : > { %1439 = vmatprep.subr.bf16.mxu1 %v3505_v27 }
  0xde   : > { %2567 = vmatpush3.bf16.msra.mxu0 %v3526_v33 }
  0xdf   : > { %1440 = vmatpush1.bf16.msra.mxu1 %v3511_v28  ;;  %2568 = vmatprep.subr.bf16.mxu0 %v4147_v16 }
  0xe0   : > { %1441 = vmatprep.subr.bf16.mxu1 %v3517_v30 }
  0xe2   : > { %2569 = vmatpush3.bf16.msra.mxu0 %v3539_v37 }
  0xe3   : > { %1442 = vmatpush1.bf16.msra.mxu1 %v3520_v31  ;;  %2570 = vmatprep.subr.bf16.mxu0 %v4147_v16 }
  0xe4   : > { %1545 = vmatprep.subr.bf16.mxu1 %v3529_v34  ;;  %v508_v34 = vsub.s32 0, %v3691_v35 }
  0xe6   : > { %2571 = vmatpush3.bf16.msra.mxu0 %v3556_v43  ;;  %v3727_v30 = vrot.slane %v676_v45, %v508_v34  ;;  %v513_v43 = vrot.slane %v504_v40, %v512_v46 }
  0xe7   : > { %2572 = vmatprep.subr.bf16.mxu0 %v4147_v16 }
  0xea   : > { %2573 = vmatpush3.bf16.msra.mxu0 %v3572_v49  ;;  %v509_v49 = vrot.slane %v504_v40, %v508_v34 }
  0xeb   : > { %2574 = vmatprep.subr.bf16.mxu0 %v4147_v16 }
  0xee   : > { %2575 = vmatpush3.bf16.msra.mxu0 %v3584_v54 }
  0xef   : > { %2580 = vmatprep.subr.bf16.mxu0 %v4147_v16 }
 0x151   : > { %v2512_v56 = vpop.f32.mrb[0].mxu1 }
 0x152   : > { %v3709_v17 = vadd.f32 %v2512_v56, %v3702_v47  ;;  %v3711_v16 = vpop.f32.mrb[1].mxu1 }
 0x153   : > { %v2513_v39 = vpop.f32.mrb[2].mxu1 }
 0x154   : > { %4216 = vst [vmem:[#allocation45_spill] sm:$0xff] %v3709_v17  ;;  %v3721_v54 = vadd.f32 %v2513_v39, %v3702_v47  ;;  %v644_v6 = vpop.f32.mrb[3].mxu1  ;;  %v4219_v17 = vmov 0   ;;  %v588_v27 = vpop.f32.mrb[0].mxu0 }
 0x155   : > { %v3724_v56 = vadd.f32 %v644_v6, %v3702_v47  ;;  %v1891_v31 = vsel %vm1890_vm8, 1, %v4219_v17  ;;  %v2130_v39 = vsel %vm2129_vm9, 1, %v4219_v17 }
 0x156   : > { %4217 = vst [vmem:[#allocation46_spill] sm:$0xff] %v3721_v54  ;;  %1893 = vperm.xlu1 %2778, %v1891_v31   ;;  %v590_v54 = vpop.f32.mrb[1].mxu0 }
 0x157   : > { %4218 = vst [vmem:[#allocation47_spill] sm:$0xff] %v3724_v56  ;;  %v592_v24 = vpop.f32.mrb[2].mxu0 }
 0x158   : > { %v3742_v31 = vadd.f32 %v592_v24, %v509_v49  ;;  %v594_v51 = vpop.f32.mrb[3].mxu0 }
 0x159   : > { %v759_v28 = vpop.f32.mrb[4].mxu1 }
 0x15a   : > { %v3734_v5 = vadd.f32 %v759_v28, %v3727_v30  ;;  %v761_v6 = vpop.f32.mrb[5].mxu1  ;;  %4223 = vst [vmem:[#allocation51_spill] sm:$0xff] %v3742_v31  ;;  %2132 = vperm.xlu1 %2778, %v2130_v39   ;;  %v3747_v28 = vadd.f32 %v594_v51, %v513_v43 }
 0x15b   : > { %v3737_v56 = vadd.f32 %v761_v6, %v3730_v52  ;;  %v763_v25 = vpop.f32.mrb[6].mxu1 }
 0x15c   : > { %4220 = vst [vmem:[#allocation48_spill] sm:$0xff] %v3734_v5  ;;  %v3740_v41 = vadd.f32 %v763_v25, %v3727_v30  ;;  %v765_v34 = vpop.f32.mrb[7].mxu1  ;;  %4225 = vst [vmem:[#allocation53_spill] sm:$0xff] %v3747_v28  ;;  %v598_v46 = vpop.f32.mrb[4].mxu0 }
 0x15d   : > { %4221 = vst [vmem:[#allocation49_spill] sm:$0xff] %v3737_v56  ;;  %v3745_v40 = vadd.f32 %v765_v34, %v3730_v52  ;;  %v3749_v37 = vadd.f32 %v598_v46, %v509_v49  ;;  %v600_v6 = vpop.f32.mrb[5].mxu0  ;;  %v4232_v46 = vsub.s32 2, %v3691_v35 }
 0x15e   : > { %4222 = vst [vmem:[#allocation50_spill] sm:$0xff] %v3740_v41  ;;  %v3754_v41 = vadd.f32 %v600_v6, %v513_v43  ;;  %v602_v24 = vpop.f32.mrb[6].mxu0 }
 0x15f   : > { %4224 = vst [vmem:[#allocation52_spill] sm:$0xff] %v3745_v40  ;;  %4226 = vst [vmem:[#allocation54_spill] sm:$0xff] %v3749_v37  ;;  %v3759_v34 = vadd.f32 %v602_v24, %v509_v49  ;;  %v604_v51 = vpop.f32.mrb[7].mxu0  ;;  %v3765_v37 = vrot.slane %v676_v45, %v4232_v46 }
 0x160   : > { %4228 = vst [vmem:[#allocation56_spill] sm:$0xff] %v3754_v41  ;;  %v3761_v28 = vadd.f32 %v604_v51, %v513_v43  ;;  %v589_v51 = vadd.f32 %v588_v27, %v509_v49  ;;  %v3781_v27 = vld [vmem:[%s4124_s9] ss:$0 sm:$0xff] }
 0x161   : > { %v769_v5 = vpop.f32.mrb[8].mxu1  ;;  %4230 = vst [vmem:[#allocation58_spill] sm:$0xff] %v3759_v34 }
 0x162   : > { %v3752_v56 = vadd.f32 %v769_v5, %v3727_v30  ;;  %v771_v25 = vpop.f32.mrb[9].mxu1  ;;  %4231 = vst [vmem:[#allocation59_spill] sm:$0xff] %v3761_v28  ;;  %v591_v28 = vadd.f32 %v590_v54, %v513_v43 }
 0x163   : > { %v3757_v31 = vadd.f32 %v771_v25, %v3730_v52  ;;  %v773_v39 = vpop.f32.mrb[10].mxu1 }
 0x164   : > { %4227 = vst [vmem:[#allocation55_spill] sm:$0xff] %v3752_v56  ;;  %v775_v40 = vpop.f32.mrb[11].mxu1  ;;  %v2518_v5 = vpop.f32.mrb[8].mxu0 }
 0x165   : > { %4229 = vst [vmem:[#allocation57_spill] sm:$0xff] %v3757_v31  ;;  %v3768_v56 = vadd.f32 %v2518_v5, %v3765_v37  ;;  %v812_v6 = vpop.f32.mrb[9].mxu0 }
 0x166   : > { %v3771_v41 = vadd.f32 %v812_v6, %v3765_v37  ;;  %v3773_v25 = vpop.f32.mrb[10].mxu0 }
 0x167   : > { %4233 = vst [vmem:[#allocation60_spill] sm:$0xff] %v3768_v56  ;;  %v815_v24 = vpop.f32.mrb[11].mxu0 }
 0x168   : > { %4234 = vst [vmem:[#allocation61_spill] sm:$0xff] %v3771_v41  ;;  %v3776_v34 = vadd.f32 %v815_v24, %v3765_v37 }
 0x16a   : > { %4235 = vst [vmem:[#allocation62_spill] sm:$0xff] %v3776_v34 }
 0x179   : > { %v1092_v31 = vpop.f32.mrb[12].mxu1 }
 0x17a   : > { %v1139_v35 = vadd.f32 %v1092_v31, %v589_v51  ;;  %v1094_v45 = vpop.f32.mrb[13].mxu1 }
 0x17b   : > { %v1146_v46 = vadd.f32 %v1094_v45, %v591_v28  ;;  %v1096_v22 = vpop.f32.mrb[14].mxu1 }
 0x17c   : > { %v2374_v21 = vmul.f32 -1.442695, %v1139_v35  ;;  %v1097_v5 = vpop.f32.mrb[15].mxu1 }
 0x17d   : > { %v2375_v56 = vmul.f32 -1.442695, %v1146_v46 }
 0x17e   : > { %2855 = vpow2.f32 %v2374_v21  ;;  %v642_v21 = vadd.f32 %v3711_v16, %v3702_v47  ;;  %v1166_v47 = vpop.permute.xlu0 %1165 }
 0x17f   : > { %2857 = vpow2.f32 %v2375_v56  ;;  %vm1167_vm10 = vcmp.eq.s32.totalorder %v1166_v47, 1 }
 0x184   : > { %v1133_v33 = vpop.f32.mrb[12].mxu0 }
 0x185   : > { %v2538_v20 = vpop.f32.mrb[13].mxu0  ;;  %v1153_v22 = vadd.f32 %v3781_v27, %v1133_v33 }
 0x186   : > { %v1136_v19 = vpop.f32.mrb[14].mxu0  ;;  %v774_v20 = vadd.f32 %v773_v39, %v3727_v30 }
 0x187   : > { %v2539_v24 = vpop.f32.mrb[15].mxu0  ;;  %v776_v19 = vadd.f32 %v775_v40, %v3730_v52 }
 0x188   : > { %v2856_v6 = vpop.eup %2855 }
 0x189   : > { %v1143_v41 = vadd.f32 1.0, %v2856_v6  ;;  %v2858_v34 = vpop.eup %2857 }
 0x18a   : > { %v1150_v43 = vadd.f32 1.0, %v2858_v34 }
 0x18b   : > { %2859 = vrcp.f32 %v1143_v41 }
 0x18c   : > { %2861 = vrcp.f32 %v1150_v43 }
 0x195   : > { %v2860_v49 = vpop.eup %2859 }
 0x196   : > { %v1154_v54 = vmul.f32 %v2860_v49, %v1153_v22  ;;  %v2862_v33 = vpop.eup %2861 }
 0x197   : > { %v1157_v5 = vsub.f32 1.0, %v2862_v33  ;;  %v1159_v39 = vmul.f32 %v2862_v33, %v3522_v32 }
 0x198   : > { %v1155_v56 = vadd.f32 %v1154_v54, %v642_v21 }
 0x199   : > { %v1338_v41 = vpop.f32.mrb[16].mxu1 }
 0x19a   : > { %2863 = vtanh.f32 %v1155_v56  ;;  %v1385_v31 = vadd.f32 %v1338_v41, %v774_v20  ;;  %v1340_v28 = vpop.f32.mrb[17].mxu1  ;;  %v4236_v20 = vmov 0.0   ;;  %v3802_v56 = vld [vmem:[%s4125_s10] ss:$0 sm:$0xff] }
 0x19b   : > { %v1392_v51 = vadd.f32 %v1340_v28, %v776_v19  ;;  %v1342_v35 = vpop.f32.mrb[18].mxu1  ;;  %v824_v28 = vadd.f32 %v3773_v25, %v3765_v37 }
 0x19c   : > { %v2400_v34 = vmul.f32 -1.442695, %v1385_v31  ;;  %v1343_v45 = vpop.f32.mrb[19].mxu1 }
 0x19d   : > { %v2401_v46 = vmul.f32 -1.442695, %v1392_v51 }
 0x19e   : > { %2865 = vpow2.f32 %v2400_v34 }
 0x19f   : > { %2867 = vpow2.f32 %v2401_v46  ;;  %v1413_v46 = vpop.permute.xlu0 %1412 }
 0x1a0   : > { %vm1414_vm11 = vcmp.eq.s32.totalorder %v1413_v46, 1 }
 0x1a4   : > { %v2864_v16 = vpop.eup %2863  ;;  %v1379_v43 = vpop.f32.mrb[16].mxu0 }
 0x1a5   : > { %v1158_v30 = vmul.f32 %v2864_v16, %v1157_v5  ;;  %v2558_v49 = vpop.f32.mrb[17].mxu0  ;;  %v1399_v41 = vadd.f32 %v3802_v56, %v1379_v43  ;;  %v4252_v43 = vld [vmem:[#allocation40_spill] sm:$0xff] }
 0x1a6   : > { %v1382_v21 = vpop.f32.mrb[18].mxu0 }
 0x1a7   : > { %v1160_v52 = vadd.f32 %v1159_v39, %v1158_v30  ;;  %v2559_v54 = vpop.f32.mrb[19].mxu0  ;;  %v4247_v30 = vld [vmem:[#allocation36_spill] sm:$0xff]  ;;  %v4248_v39 = vld [vmem:[#allocation43_spill] sm:$0xff] }
 0x1a8   : > { %v2866_v40 = vpop.eup %2865  ;;  %v4253_v21 = vld [vmem:[#allocation51_spill] sm:$0xff] }
 0x1a9   : > { %v1389_v6 = vadd.f32 1.0, %v2866_v40  ;;  %v3790_v24 = vsel %vm1167_vm10, %v1160_v52, %v3522_v32  ;;  %v2868_v32 = vpop.eup %2867  ;;  %v4249_v52 = vld [vmem:[#allocation37_spill] sm:$0xff]  ;;  %v4250_v40 = vld [vmem:[#allocation38_spill] sm:$0xff] }
 0x1aa   : > { %v1416_v22 = vpack.c.bf16 %v3790_v24, %v3790_v24  ;;  %v1396_v19 = vadd.f32 1.0, %v2868_v32 }
 0x1ab   : > { %2869 = vrcp.f32 %v1389_v6  ;;  %v4251_v6 = vld [vmem:[#allocation44_spill] sm:$0xff] }
 0x1ac   : > { %1417 = vst [vmem:[%s3423_s5] sm:$0xf] %v1416_v22  ;;  %1460 = vmatmul.mubr.bf16.vlgmr.msra.gmra.mrb[20].mxu1 %v1416_v22  ;;  %2577 = vmatmul.mubr.bf16.vlgmr.msra.gmra.mrb[20].mxu0 %v1416_v22  ;;  %2871 = vrcp.f32 %v1396_v19 }
 0x1ad   : > { %1546 = vmatpush1.bf16.msra.mxu1 %v3535_v36  ;;  %2581 = vmatpush3.bf16.msra.mxu0 %v3596_v58 }
 0x1ae   : > { %1547 = vmatprep.subr.bf16.mxu1 %v3542_v38  ;;  %2582 = vmatprep.subr.bf16.mxu0 %v4236_v20 }
 0x1af   : > { %1577 = vmatprep.mubr.bf16.mxu1 %v4219_v17  ;;  %2596 = vmatprep.mubr.msk.bf16.mxu0 %vm3161_vm1, %v4236_v20 }
 0x1b1   : > { %1548 = vmatpush1.bf16.msra.mxu1 %v3553_v42  ;;  %2583 = vmatpush3.bf16.msra.mxu0 %v3606_v61 }
 0x1b2   : > { %1549 = vmatprep.subr.bf16.mxu1 %v3561_v44  ;;  %2584 = vmatprep.subr.bf16.mxu0 %v4236_v20 }
 0x1b5   : > { %v2870_v31 = vpop.eup %2869  ;;  %1550 = vmatpush1.bf16.msra.mxu1 %v3569_v48  ;;  %2585 = vmatpush3.bf16.msra.mxu0 %v3618_v0 }
 0x1b6   : > { %v1400_v51 = vmul.f32 %v2870_v31, %v1399_v41  ;;  %1551 = vmatprep.subr.bf16.mxu1 %v3576_v50  ;;  %2586 = vmatprep.subr.bf16.mxu0 %v4236_v20  ;;  %v2872_v37 = vpop.eup %2871  ;;  %v4254_v41 = vld [vmem:[#allocation53_spill] sm:$0xff] }
 0x1b7   : > { %v1403_v25 = vsub.f32 1.0, %v2872_v37  ;;  %v1405_v45 = vmul.f32 %v2872_v37, %v3627_v3 }
 0x1b8   : > { %v1401_v35 = vadd.f32 %v1400_v51, %v824_v28 }
 0x1b9   : > { %1552 = vmatpush1.bf16.msra.mxu1 %v3581_v53  ;;  %2587 = vmatpush3.bf16.msra.mxu0 %v3630_v4 }
 0x1ba   : > { %2873 = vtanh.f32 %v1401_v35  ;;  %1553 = vmatprep.subr.bf16.mxu1 %v3588_v55  ;;  %2588 = vmatprep.subr.bf16.mxu0 %v4236_v20 }
 0x1bd   : > { %1554 = vmatpush1.bf16.msra.mxu1 %v3593_v57  ;;  %2589 = vmatpush3.bf16.msra.mxu0 %v3638_v8 }
 0x1be   : > { %1555 = vmatprep.subr.bf16.mxu1 %v3599_v59  ;;  %2590 = vmatprep.subr.bf16.mxu0 %v4236_v20 }
 0x1c1   : > { %1556 = vmatpush1.bf16.msra.mxu1 %v3603_v60  ;;  %2591 = vmatpush3.bf16.msra.mxu0 %v3643_v9 }
 0x1c2   : > { %1557 = vmatprep.subr.bf16.mxu1 %v3609_v62  ;;  %2592 = vmatprep.subr.bf16.mxu0 %v4236_v20 }
 0x1c4   : > { %v2874_v34 = vpop.eup %2873 }
 0x1c5   : > { %v1404_v33 = vmul.f32 %v2874_v34, %v1403_v25  ;;  %1558 = vmatpush1.bf16.msra.mxu1 %v3615_v63  ;;  %2593 = vmatpush3.bf16.msra.mxu0 %v3650_v10 }
 0x1c6   : > { %1559 = vmatprep.subr.bf16.mxu1 %v3621_v1  ;;  %2594 = vmatprep.subr.bf16.mxu0 %v4236_v20 }
 0x1c7   : > { %v1406_v5 = vadd.f32 %v1405_v45, %v1404_v33 }
 0x1c9   : > { %1560 = vmatpush1.bf16.msra.mxu1 %v3625_v2  ;;  %2595 = vmatpush3.bf16.msra.mxu0 %v3656_v12  ;;  %v3838_v16 = vsel %vm1414_vm11, %v1406_v5, %v3627_v3  ;;  %v4246_v3 = vld [vmem:[#allocation35_spill] sm:$0xff] }
 0x1ca   : > { %v1418_v47 = vpack.c.bf16 %v3838_v16, %v3838_v16  ;;  %1668 = vmatprep.subr.bf16.mxu1 %v3441_v7  ;;  %2600 = vmatprep.subr.bf16.mxu0 %v4236_v20  ;;  %v4237_v7 = vld [vmem:[#allocation29_spill] sm:$0xff] }
 0x1cc   : > { %2402 = vst [vmem:[%s3425_s23 + $0xc] sm:$0xf] %v1418_v47  ;;  %1578 = vmatmul.mubr.bf16.vlgmr.msra.gmra.mrb[24].mxu1 %v1418_v47  ;;  %2597 = vmatmul.mubr.bf16.vlgmr.msra.gmra.mrb[24].mxu0 %v1418_v47 }
 0x1cd   : > { %1669 = vmatpush1.bf16.msra.mxu1 %v3454_v11  ;;  %2601 = vmatpush3.bf16.msra.mxu0 %v3492_v23  ;;  %v4238_v11 = vld [vmem:[#allocation30_spill] sm:$0xff]  ;;  %v4240_v23 = vld [vmem:[#allocation31_spill] sm:$0xff] }
 0x1ce   : > { %1670 = vmatprep.subr.bf16.mxu1 %v3459_v13  ;;  %2602 = vmatprep.subr.bf16.mxu0 %v4236_v20  ;;  %v4239_v13 = vld [vmem:[#allocation39_spill] sm:$0xff] }
 0x1cf   : > { %1700 = vmatprep.mubr.bf16.mxu1 %v4219_v17  ;;  %2616 = vmatprep.mubr.msk.bf16.mxu0 %vm3161_vm1, %v4236_v20 }
 0x1d1   : > { %1671 = vmatpush1.bf16.msra.mxu1 %v3464_v14  ;;  %2603 = vmatpush3.bf16.msra.mxu0 %v3502_v26  ;;  %v4241_v14 = vld [vmem:[#allocation32_spill] sm:$0xff]  ;;  %v4243_v26 = vld [vmem:[#allocation33_spill] sm:$0xff] }
 0x1d2   : > { %1672 = vmatprep.subr.bf16.mxu1 %v3467_v15  ;;  %2604 = vmatprep.subr.bf16.mxu0 %v4236_v20  ;;  %v4242_v15 = vld [vmem:[#allocation41_spill] sm:$0xff] }
 0x1d5   : > { %1673 = vmatpush1.bf16.msra.mxu1 %v3474_v18  ;;  %2605 = vmatpush3.bf16.msra.mxu0 %v3514_v29  ;;  %v4244_v18 = vld [vmem:[#allocation34_spill] sm:$0xff] }
 0x1d6   : > { %1674 = vmatprep.subr.bf16.mxu1 %v4237_v7  ;;  %2606 = vmatprep.subr.bf16.mxu0 %v4236_v20  ;;  %v4245_v29 = vld [vmem:[#allocation42_spill] sm:$0xff] }
 0x1d9   : > { %1675 = vmatpush1.bf16.msra.mxu1 %v4238_v11  ;;  %2607 = vmatpush3.bf16.msra.mxu0 %v4239_v13 }
 0x1da   : > { %1676 = vmatprep.subr.bf16.mxu1 %v4240_v23  ;;  %2608 = vmatprep.subr.bf16.mxu0 %v4236_v20  ;;  %v4255_v23 = vld [vmem:[#allocation47_spill] sm:$0xff] }
 0x1dd   : > { %1677 = vmatpush1.bf16.msra.mxu1 %v4241_v14  ;;  %2609 = vmatpush3.bf16.msra.mxu0 %v4242_v15 }
 0x1de   : > { %1678 = vmatprep.subr.bf16.mxu1 %v4243_v26  ;;  %2610 = vmatprep.subr.bf16.mxu0 %v4236_v20 }
 0x1e1   : > { %1679 = vmatpush1.bf16.msra.mxu1 %v4244_v18  ;;  %2611 = vmatpush3.bf16.msra.mxu0 %v4245_v29 }
 0x1e2   : > { %1680 = vmatprep.subr.bf16.mxu1 %v4246_v3  ;;  %2612 = vmatprep.subr.bf16.mxu0 %v4236_v20  ;;  %v4256_v3 = vld [vmem:[#allocation55_spill] sm:$0xff] }
 0x1e5   : > { %1681 = vmatpush1.bf16.msra.mxu1 %v4247_v30  ;;  %2613 = vmatpush3.bf16.msra.mxu0 %v4248_v39 }
 0x1e6   : > { %1682 = vmatprep.subr.bf16.mxu1 %v4249_v52  ;;  %2614 = vmatprep.subr.bf16.mxu0 %v4236_v20 }
 0x1e9   : > { %1683 = vmatpush1.bf16.msra.mxu1 %v4250_v40  ;;  %2615 = vmatpush3.bf16.msra.mxu0 %v4251_v6 }
 0x1ea   : > { %1785 = vmatprep.subr.bf16.mxu1 %v4252_v43  ;;  %2620 = vmatprep.subr.bf16.mxu0 %v4236_v20  ;;  %v4257_v43 = vld [vmem:[#allocation57_spill] sm:$0xff] }
 0x27f   : > { %v1461_v22 = vpop.f32.mrb[20].mxu1  ;;  %v1502_v49 = vpop.f32.mrb[20].mxu0 }
 0x280   : > { %v1508_v54 = vadd.f32 %v1461_v22, %v4253_v21  ;;  %v1463_v32 = vpop.f32.mrb[21].mxu1  ;;  %v2578_v19 = vpop.f32.mrb[21].mxu0  ;;  %v1522_v47 = vadd.f32 %v3781_v27, %v1502_v49 }
 0x281   : > { %v1515_v31 = vadd.f32 %v1463_v32, %v4254_v41  ;;  %v1465_v28 = vpop.f32.mrb[22].mxu1  ;;  %v1505_v51 = vpop.f32.mrb[22].mxu0 }
 0x282   : > { %v2403_v35 = vmul.f32 -1.442695, %v1508_v54  ;;  %v1466_v37 = vpop.f32.mrb[23].mxu1  ;;  %v2579_v25 = vpop.f32.mrb[23].mxu0 }
 0x283   : > { %v2404_v34 = vmul.f32 -1.442695, %v1515_v31 }
 0x284   : > { %2875 = vpow2.f32 %v2403_v35  ;;  %v1536_v35 = vpop.permute.xlu1 %1535 }
 0x285   : > { %2877 = vpow2.f32 %v2404_v34  ;;  %vm1537_vm12 = vcmp.eq.s32.totalorder %v1536_v35, 1  ;;  %v4260_v35 = vld [vmem:[#allocation56_spill] sm:$0xff] }
 0x28e   : > { %v2876_v45 = vpop.eup %2875 }
 0x28f   : > { %v1512_v33 = vadd.f32 1.0, %v2876_v45  ;;  %v2878_v46 = vpop.eup %2877 }
 0x290   : > { %v1519_v5 = vadd.f32 1.0, %v2878_v46 }
 0x291   : > { %2879 = vrcp.f32 %v1512_v33 }
 0x292   : > { %2881 = vrcp.f32 %v1519_v5 }
 0x29b   : > { %v2880_v7 = vpop.eup %2879 }
 0x29c   : > { %v1523_v11 = vmul.f32 %v2880_v7, %v1522_v47  ;;  %v2882_v49 = vpop.eup %2881 }
 0x29d   : > { %v1526_v28 = vsub.f32 1.0, %v2882_v49  ;;  %v1528_v25 = vmul.f32 %v2882_v49, %v3790_v24  ;;  %v4259_v49 = vld [vmem:[#allocation54_spill] sm:$0xff] }
 0x29e   : > { %v1524_v14 = vadd.f32 %v1523_v11, %v4255_v23  ;;  %v2937_v23 = vld [vmem:[#allocation6 + $0x8] ss:$12 sps:$4 sm:$0xff]  }
 0x29f   : > { %v1579_v26 = vpop.f32.mrb[24].mxu1  ;;  %v1620_v18 = vpop.f32.mrb[24].mxu0 }
 0x2a0   : > { %2883 = vtanh.f32 %v1524_v14  ;;  %v1626_v30 = vadd.f32 %v1579_v26, %v4256_v3  ;;  %v1581_v52 = vpop.f32.mrb[25].mxu1  ;;  %v2598_v40 = vpop.f32.mrb[25].mxu0  ;;  %v2940_v14 = vld [vmem:[#allocation6 + $0x20] ss:$12 sps:$4 sm:$0xff]   ;;  %v2943_v3 = vld [vmem:[#allocation6 + $0x38] ss:$12 sps:$4 sm:$0xff]  }
 0x2a1   : > { %v1633_v22 = vadd.f32 %v1581_v52, %v4257_v43  ;;  %v1583_v21 = vpop.f32.mrb[26].mxu1  ;;  %v1623_v54 = vpop.f32.mrb[26].mxu0  ;;  %v2941_v26 = vld [vmem:[#allocation6 + $0x34] ss:$12 sps:$4 sm:$0xff]   ;;  %v2946_v40 = vld [vmem:[#allocation6 + $0x64] ss:$12 sps:$4 sm:$0xff]  }
 0x2a2   : > { %v2405_v32 = vmul.f32 -1.442695, %v1626_v30  ;;  %v1584_v19 = vpop.f32.mrb[27].mxu1  ;;  %v2599_v41 = vpop.f32.mrb[27].mxu0  ;;  %v2944_v30 = vld [vmem:[#allocation6 + $0x4c] ss:$12 sps:$4 sm:$0xff]  }
 0x2a3   : > { %v2406_v31 = vmul.f32 -1.442695, %v1633_v22  ;;  %v2945_v52 = vld [vmem:[#allocation6 + $0x48] ss:$12 sps:$4 sm:$0xff]   ;;  %v2947_v43 = vld [vmem:[#allocation6 + $0x60] ss:$12 sps:$4 sm:$0xff]  }
 0x2a4   : > { %2885 = vpow2.f32 %v2405_v32  ;;  %v2948_v22 = vld [vmem:[#allocation6 + $0x7c] ss:$12 sps:$4 sm:$0xff]   ;;  %v2949_v21 = vld [vmem:[#allocation6 + $0x78] ss:$12 sps:$4 sm:$0xff]   ;;  %v2950_v54 = vld [vmem:[#allocation6 + $0x94] ss:$12 sps:$4 sm:$0xff]  }
 0x2a5   : > { %2887 = vpow2.f32 %v2406_v31  ;;  %v2952_v32 = vld [vmem:[#allocation6 + $0xac] ss:$12 sps:$4 sm:$0xff]   ;;  %v2954_v19 = vld [vmem:[#allocation9 + $0x4] ss:$12 sps:$4 sm:$0xff]  }
 0x2aa   : > { %v2884_v51 = vpop.eup %2883 }
 0x2ab   : > { %v1527_v37 = vmul.f32 %v2884_v51, %v1526_v28 }
 0x2ad   : > { %v1529_v34 = vadd.f32 %v1528_v25, %v1527_v37 }
 0x2ae   : > { %v2886_v45 = vpop.eup %2885 }
 0x2af   : > { %v1630_v33 = vadd.f32 1.0, %v2886_v45  ;;  %v3888_v46 = vsel %vm1537_vm12, %v1529_v34, %v3790_v24  ;;  %v2888_v47 = vpop.eup %2887 }
 0x2b0   : > { %v1657_v5 = vpack.c.bf16 %v3888_v46, %v3888_v46  ;;  %v1637_v24 = vadd.f32 1.0, %v2888_v47 }
 0x2b1   : > { %2889 = vrcp.f32 %v1630_v33 }
 0x2b2   : > { %2407 = vst [vmem:[%s3423_s5 + $0x4] sm:$0xf] %v1657_v5  ;;  %1701 = vmatmul.mubr.bf16.vlgmr.msra.gmra.mrb[28].mxu1 %v1657_v5  ;;  %2617 = vmatmul.mubr.bf16.vlgmr.msra.gmra.mrb[28].mxu0 %v1657_v5  ;;  %2891 = vrcp.f32 %v1637_v24 }
 0x2b3   : > { %1786 = vmatpush1.bf16.msra.mxu1 %v3535_v36  ;;  %2621 = vmatpush3.bf16.msra.mxu0 %v3596_v58  ;;  %v1640_v36 = vadd.f32 %v3802_v56, %v1620_v18  ;;  %v2942_v18 = vld [vmem:[#allocation6 + $0x30] ss:$12 sps:$4 sm:$0xff]  }
 0x2b4   : > { %1787 = vmatprep.subr.bf16.mxu1 %v3542_v38  ;;  %2622 = vmatprep.subr.bf16.mxu0 %v4236_v20 }
 0x2b5   : > { %1817 = vmatprep.mubr.bf16.mxu1 %v4219_v17  ;;  %2636 = vmatprep.mubr.msk.bf16.mxu0 %vm3161_vm1, %v4236_v20 }
 0x2b7   : > { %1788 = vmatpush1.bf16.msra.mxu1 %v3553_v42  ;;  %2623 = vmatpush3.bf16.msra.mxu0 %v3606_v61  ;;  %v4258_v42 = vld [vmem:[#allocation60_spill] sm:$0xff] }
 0x2b8   : > { %1789 = vmatprep.subr.bf16.mxu1 %v3561_v44  ;;  %2624 = vmatprep.subr.bf16.mxu0 %v4236_v20 }
 0x2bb   : > { %v2890_v38 = vpop.eup %2889  ;;  %1790 = vmatpush1.bf16.msra.mxu1 %v3569_v48  ;;  %2625 = vmatpush3.bf16.msra.mxu0 %v3618_v0 }
 0x2bc   : > { %v1641_v7 = vmul.f32 %v2890_v38, %v1640_v36  ;;  %1791 = vmatprep.subr.bf16.mxu1 %v3576_v50  ;;  %2626 = vmatprep.subr.bf16.mxu0 %v4236_v20  ;;  %v2892_v44 = vpop.eup %2891 }
 0x2bd   : > { %v1644_v48 = vsub.f32 1.0, %v2892_v44 }
 0x2be   : > { %v1642_v11 = vadd.f32 %v1641_v7, %v4258_v42 }
 0x2bf   : > { %1792 = vmatpush1.bf16.msra.mxu1 %v3581_v53  ;;  %2627 = vmatpush3.bf16.msra.mxu0 %v3630_v4 }
 0x2c0   : > { %2893 = vtanh.f32 %v1642_v11  ;;  %1793 = vmatprep.subr.bf16.mxu1 %v3588_v55  ;;  %2628 = vmatprep.subr.bf16.mxu0 %v4236_v20  ;;  %v1646_v55 = vmul.f32 %v2892_v44, %v3838_v16  ;;  %v4261_v11 = vld [vmem:[#allocation45_spill] sm:$0xff] }
 0x2c3   : > { %1794 = vmatpush1.bf16.msra.mxu1 %v3593_v57  ;;  %2629 = vmatpush3.bf16.msra.mxu0 %v3638_v8  ;;  %v1654_v57 = vpop.permute.xlu1 %1653 }
 0x2c4   : > { %1795 = vmatprep.subr.bf16.mxu1 %v3599_v59  ;;  %2630 = vmatprep.subr.bf16.mxu0 %v4236_v20  ;;  %vm1655_vm13 = vcmp.eq.s32.totalorder %v1654_v57, 1 }
 0x2c7   : > { %1796 = vmatpush1.bf16.msra.mxu1 %v3603_v60  ;;  %2631 = vmatpush3.bf16.msra.mxu0 %v3643_v9 }
 0x2c8   : > { %1797 = vmatprep.subr.bf16.mxu1 %v3609_v62  ;;  %2632 = vmatprep.subr.bf16.mxu0 %v4236_v20 }
 0x2ca   : > { %v2894_v50 = vpop.eup %2893 }
 0x2cb   : > { %v1645_v53 = vmul.f32 %v2894_v50, %v1644_v48  ;;  %1798 = vmatpush1.bf16.msra.mxu1 %v3615_v63  ;;  %2633 = vmatpush3.bf16.msra.mxu0 %v3650_v10  ;;  %v2935_v63 = vld [vmem:[#allocation6 + $0x4] ss:$12 sps:$4 sm:$0xff]  }
 0x2cc   : > { %1799 = vmatprep.subr.bf16.mxu1 %v3621_v1  ;;  %2634 = vmatprep.subr.bf16.mxu0 %v4236_v20  ;;  %v2936_v1 = vld [vmem:[#allocation6] ss:$12 sps:$4 sm:$0xff]  }
 0x2cd   : > { %v1647_v59 = vadd.f32 %v1646_v55, %v1645_v53  ;;  %v4262_v53 = vld [vmem:[#allocation50_spill] sm:$0xff] }
 0x2cf   : > { %v3928_v60 = vsel %vm1655_vm13, %v1647_v59, %v3838_v16  ;;  %1800 = vmatpush1.bf16.msra.mxu1 %v3625_v2  ;;  %2635 = vmatpush3.bf16.msra.mxu0 %v3656_v12  ;;  %v2938_v16 = vld [vmem:[#allocation6 + $0x1c] ss:$12 sps:$4 sm:$0xff]   ;;  %v2939_v2 = vld [vmem:[#allocation6 + $0x18] ss:$12 sps:$4 sm:$0xff]  }
 0x2d0   : > { %v1660_v62 = vpack.c.bf16 %v3928_v60, %v3928_v60  ;;  %1908 = vmatprep.subr.bf16.mxu1 %v2935_v63  ;;  %2640 = vmatprep.subr.bf16.mxu0 %v4236_v20 }
 0x2d2   : > { %2408 = vst [vmem:[%s3425_s23 + $0x8] sm:$0xf] %v1660_v62  ;;  %1818 = vmatmul.mubr.bf16.vlgmr.msra.gmra.mrb[32].mxu1 %v1660_v62  ;;  %2637 = vmatmul.mubr.bf16.vlgmr.msra.gmra.mrb[32].mxu0 %v1660_v62  ;;  %v4263_v62 = vld [vmem:[#allocation52_spill] sm:$0xff] }
 0x2d3   : > { %1909 = vmatpush1.bf16.msra.mxu1 %v2936_v1  ;;  %2641 = vmatpush3.bf16.msra.mxu0 %v2937_v23 }
 0x2d4   : > { %1910 = vmatprep.subr.bf16.mxu1 %v2938_v16  ;;  %2642 = vmatprep.subr.bf16.mxu0 %v4236_v20 }
 0x2d5   : > { %1940 = vmatprep.mubr.bf16.mxu1 %v4219_v17  ;;  %2656 = vmatprep.mubr.msk.bf16.mxu0 %vm3161_vm1, %v4236_v20 }
 0x2d7   : > { %1911 = vmatpush1.bf16.msra.mxu1 %v2939_v2  ;;  %2643 = vmatpush3.bf16.msra.mxu0 %v2940_v14 }
 0x2d8   : > { %1912 = vmatprep.subr.bf16.mxu1 %v2941_v26  ;;  %2644 = vmatprep.subr.bf16.mxu0 %v4236_v20 }
 0x2db   : > { %1913 = vmatpush1.bf16.msra.mxu1 %v2942_v18  ;;  %2645 = vmatpush3.bf16.msra.mxu0 %v2943_v3 }
 0x2dc   : > { %1914 = vmatprep.subr.bf16.mxu1 %v2944_v30  ;;  %2646 = vmatprep.subr.bf16.mxu0 %v4236_v20 }
 0x2df   : > { %1915 = vmatpush1.bf16.msra.mxu1 %v2945_v52  ;;  %2647 = vmatpush3.bf16.msra.mxu0 %v4239_v13  ;;  %v2951_v13 = vld [vmem:[#allocation6 + $0x90] ss:$12 sps:$4 sm:$0xff]  }
 0x2e0   : > { %1916 = vmatprep.subr.bf16.mxu1 %v2946_v40  ;;  %2648 = vmatprep.subr.bf16.mxu0 %v4236_v20 }
 0x2e3   : > { %1917 = vmatpush1.bf16.msra.mxu1 %v2947_v43  ;;  %2649 = vmatpush3.bf16.msra.mxu0 %v4242_v15  ;;  %v2953_v15 = vld [vmem:[#allocation6 + $0xa8] ss:$12 sps:$4 sm:$0xff]   ;;  %v1777_v43 = vpop.permute.xlu0 %1776 }
 0x2e4   : > { %1918 = vmatprep.subr.bf16.mxu1 %v2948_v22  ;;  %2650 = vmatprep.subr.bf16.mxu0 %v4236_v20  ;;  %vm1778_vm14 = vcmp.eq.s32.totalorder %v1777_v43, 1  ;;  %v4268_v43 = vld [vmem:[#allocation48_spill] sm:$0xff] }
 0x2e7   : > { %1919 = vmatpush1.bf16.msra.mxu1 %v2949_v21  ;;  %2651 = vmatpush3.bf16.msra.mxu0 %v4245_v29 }
 0x2e8   : > { %1920 = vmatprep.subr.bf16.mxu1 %v2950_v54  ;;  %2652 = vmatprep.subr.bf16.mxu0 %v4236_v20 }
 0x2eb   : > { %1921 = vmatpush1.bf16.msra.mxu1 %v2951_v13  ;;  %2653 = vmatpush3.bf16.msra.mxu0 %v4248_v39 }
 0x2ec   : > { %1922 = vmatprep.subr.bf16.mxu1 %v2952_v32  ;;  %2654 = vmatprep.subr.bf16.mxu0 %v4236_v20 }
 0x2ef   : > { %1923 = vmatpush1.bf16.msra.mxu1 %v2953_v15  ;;  %2655 = vmatpush3.bf16.msra.mxu0 %v4251_v6  ;;  %v2955_v15 = vld [vmem:[#allocation9] ss:$12 sps:$4 sm:$0xff]  }
 0x2f0   : > { %2025 = vmatprep.subr.bf16.mxu1 %v2954_v19  ;;  %2660 = vmatprep.subr.bf16.mxu0 %v4236_v20  ;;  %v2956_v19 = vld [vmem:[#allocation9 + $0x1c] ss:$12 sps:$4 sm:$0xff]  }
 0x385   : > { %v1702_v29 = vpop.f32.mrb[28].mxu1  ;;  %v1743_v41 = vpop.f32.mrb[28].mxu0 }
 0x386   : > { %v1749_v31 = vadd.f32 %v1702_v29, %v4259_v49  ;;  %v1704_v28 = vpop.f32.mrb[29].mxu1  ;;  %v2618_v51 = vpop.f32.mrb[29].mxu0  ;;  %v1763_v38 = vadd.f32 %v3781_v27, %v1743_v41  ;;  %v2958_v49 = vld [vmem:[#allocation9 + $0x34] ss:$12 sps:$4 sm:$0xff]  }
 0x387   : > { %v1756_v39 = vadd.f32 %v1704_v28, %v4260_v35  ;;  %v1706_v37 = vpop.f32.mrb[30].mxu1  ;;  %v1746_v25 = vpop.f32.mrb[30].mxu0  ;;  %v2959_v28 = vld [vmem:[#allocation9 + $0x30] ss:$12 sps:$4 sm:$0xff]   ;;  %v2960_v51 = vld [vmem:[#allocation9 + $0x4c] ss:$12 sps:$4 sm:$0xff]  }
 0x388   : > { %v2409_v34 = vmul.f32 -1.442695, %v1749_v31  ;;  %v1707_v45 = vpop.f32.mrb[31].mxu1  ;;  %v2619_v33 = vpop.f32.mrb[31].mxu0  ;;  %v4264_v35 = vld [vmem:[#allocation62_spill] sm:$0xff] }
 0x389   : > { %v2410_v5 = vmul.f32 -1.442695, %v1756_v39  ;;  %v2961_v39 = vld [vmem:[#allocation9 + $0x48] ss:$12 sps:$4 sm:$0xff]   ;;  %v2962_v37 = vld [vmem:[#allocation9 + $0x64] ss:$12 sps:$4 sm:$0xff]  }
 0x38a   : > { %2895 = vpow2.f32 %v2409_v34  ;;  %v2963_v25 = vld [vmem:[#allocation9 + $0x60] ss:$12 sps:$4 sm:$0xff]   ;;  %v2965_v45 = vld [vmem:[#allocation9 + $0x78] ss:$12 sps:$4 sm:$0xff]  }
 0x38b   : > { %2897 = vpow2.f32 %v2410_v5  ;;  %v2966_v33 = vld [vmem:[#allocation9 + $0x94] ss:$12 sps:$4 sm:$0xff]  }
 0x394   : > { %v2896_v6 = vpop.eup %2895 }
 0x395   : > { %v1753_v47 = vadd.f32 1.0, %v2896_v6  ;;  %v2898_v24 = vpop.eup %2897 }
 0x396   : > { %v1760_v36 = vadd.f32 1.0, %v2898_v24  ;;  %v2968_v24 = vld [vmem:[#allocation9 + $0xac] ss:$12 sps:$4 sm:$0xff]  }
 0x397   : > { %2899 = vrcp.f32 %v1753_v47  ;;  %v2967_v47 = vld [vmem:[#allocation9 + $0x90] ss:$12 sps:$4 sm:$0xff]  }
 0x398   : > { %2901 = vrcp.f32 %v1760_v36  ;;  %v1894_v36 = vpop.permute.xlu1 %1893 }
 0x399   : > { %vm1895_vm15 = vcmp.eq.s32.totalorder %v1894_v36, 1 }
 0x3a1   : > { %v2900_v7 = vpop.eup %2899 }
 0x3a2   : > { %v1764_v42 = vmul.f32 %v2900_v7, %v1763_v38  ;;  %v2902_v26 = vpop.eup %2901  ;;  %v2969_v38 = vld [vmem:[#allocation9 + $0xa8] ss:$12 sps:$4 sm:$0xff]  }
 0x3a3   : > { %v1767_v3 = vsub.f32 1.0, %v2902_v26  ;;  %v1769_v52 = vmul.f32 %v2902_v26, %v3888_v46 }
 0x3a4   : > { %v1765_v44 = vadd.f32 %v1764_v42, %v4261_v11 }
 0x3a5   : > { %v1819_v48 = vpop.f32.mrb[32].mxu1  ;;  %v1860_v50 = vpop.f32.mrb[32].mxu0 }
 0x3a6   : > { %2903 = vtanh.f32 %v1765_v44  ;;  %v1866_v55 = vadd.f32 %v1819_v48, %v4262_v53  ;;  %v1821_v57 = vpop.f32.mrb[33].mxu1  ;;  %v2638_v59 = vpop.f32.mrb[33].mxu0  ;;  %v4265_v44 = vld [vmem:[#allocation58_spill] sm:$0xff]  ;;  %v4266_v53 = vld [vmem:[#allocation59_spill] sm:$0xff] }
 0x3a7   : > { %v1873_v63 = vadd.f32 %v1821_v57, %v4263_v62  ;;  %v1823_v1 = vpop.f32.mrb[34].mxu1  ;;  %v1863_v23 = vpop.f32.mrb[34].mxu0 }
 0x3a8   : > { %v2411_v16 = vmul.f32 -1.442695, %v1866_v55  ;;  %v1824_v2 = vpop.f32.mrb[35].mxu1  ;;  %v2639_v14 = vpop.f32.mrb[35].mxu0 }
 0x3a9   : > { %v2412_v18 = vmul.f32 -1.442695, %v1873_v63 }
 0x3aa   : > { %2905 = vpow2.f32 %v2411_v16 }
 0x3ab   : > { %2907 = vpow2.f32 %v2412_v18 }
 0x3b0   : > { %v2904_v30 = vpop.eup %2903 }
 0x3b1   : > { %v1768_v40 = vmul.f32 %v2904_v30, %v1767_v3  ;;  %v4267_v3 = vld [vmem:[#allocation46_spill] sm:$0xff] }
 0x3b3   : > { %v1770_v22 = vadd.f32 %v1769_v52, %v1768_v40 }
 0x3b4   : > { %v2906_v21 = vpop.eup %2905 }
 0x3b5   : > { %v1870_v54 = vadd.f32 1.0, %v2906_v21  ;;  %v3960_v13 = vsel %vm1778_vm14, %v1770_v22, %v3888_v46  ;;  %v2908_v29 = vpop.eup %2907  ;;  %v2957_v46 = vld [vmem:[#allocation9 + $0x18] ss:$12 sps:$4 sm:$0xff]  }
 0x3b6   : > { %v1897_v32 = vpack.c.bf16 %v3960_v13, %v3960_v13  ;;  %v1877_v41 = vadd.f32 1.0, %v2908_v29 }
 0x3b7   : > { %2909 = vrcp.f32 %v1870_v54 }
 0x3b8   : > { %2413 = vst [vmem:[%s3423_s5 + $0x8] sm:$0xf] %v1897_v32  ;;  %1941 = vmatmul.mubr.bf16.vlgmr.msra.gmra.mrb[36].mxu1 %v1897_v32  ;;  %2657 = vmatmul.mubr.bf16.vlgmr.msra.gmra.mrb[36].mxu0 %v1897_v32  ;;  %2911 = vrcp.f32 %v1877_v41  ;;  %v4269_v32 = vld [vmem:[#allocation49_spill] sm:$0xff] }
 0x3b9   : > { %2026 = vmatpush1.bf16.msra.mxu1 %v2955_v15  ;;  %2661 = vmatpush3.bf16.msra.mxu0 %v3596_v58  ;;  %v1880_v58 = vadd.f32 %v3802_v56, %v1860_v50 }
 0x3ba   : > { %2027 = vmatprep.subr.bf16.mxu1 %v2956_v19  ;;  %2662 = vmatprep.subr.bf16.mxu0 %v4236_v20 }
 0x3bb   : > { %2057 = vmatprep.mubr.bf16.mxu1 %v4219_v17  ;;  %2676 = vmatprep.mubr.msk.bf16.mxu0 %vm3161_vm1, %v4236_v20 }
 0x3bd   : > { %2028 = vmatpush1.bf16.msra.mxu1 %v2957_v46  ;;  %2663 = vmatpush3.bf16.msra.mxu0 %v3606_v61 }
 0x3be   : > { %2029 = vmatprep.subr.bf16.mxu1 %v2958_v49  ;;  %2664 = vmatprep.subr.bf16.mxu0 %v4236_v20 }
 0x3c1   : > { %v2910_v31 = vpop.eup %2909  ;;  %2030 = vmatpush1.bf16.msra.mxu1 %v2959_v28  ;;  %2665 = vmatpush3.bf16.msra.mxu0 %v3618_v0  ;;  %v2964_v0 = vld [vmem:[#allocation9 + $0x7c] ss:$12 sps:$4 sm:$0xff]  }
 0x3c2   : > { %v1881_v17 = vmul.f32 %v2910_v31, %v1880_v58  ;;  %2031 = vmatprep.subr.bf16.mxu1 %v2960_v51  ;;  %2666 = vmatprep.subr.bf16.mxu0 %v4236_v20  ;;  %v2912_v34 = vpop.eup %2911 }
 0x3c3   : > { %v1886_v6 = vmul.f32 %v2912_v34, %v3928_v60 }
 0x3c4   : > { %v1882_v61 = vadd.f32 %v1881_v17, %v4264_v35  ;;  %v2017_v17 = vpop.permute.xlu0 %2016 }
 0x3c5   : > { %2032 = vmatpush1.bf16.msra.mxu1 %v2961_v39  ;;  %2667 = vmatpush3.bf16.msra.mxu0 %v3630_v4  ;;  %v1884_v4 = vsub.f32 1.0, %v2912_v34  ;;  %vm2018_vm0 = vcmp.eq.s32.totalorder %v2017_v17, 1 }
 0x3c6   : > { %2913 = vtanh.f32 %v1882_v61  ;;  %2033 = vmatprep.subr.bf16.mxu1 %v2962_v37  ;;  %2668 = vmatprep.subr.bf16.mxu0 %v4236_v20 }
 0x3c9   : > { %2034 = vmatpush1.bf16.msra.mxu1 %v2963_v25  ;;  %2669 = vmatpush3.bf16.msra.mxu0 %v3638_v8 }
 0x3ca   : > { %2035 = vmatprep.subr.bf16.mxu1 %v2964_v0  ;;  %2670 = vmatprep.subr.bf16.mxu0 %v4236_v20 }
 0x3cd   : > { %2036 = vmatpush1.bf16.msra.mxu1 %v2965_v45  ;;  %2671 = vmatpush3.bf16.msra.mxu0 %v3643_v9 }
 0x3ce   : > { %2037 = vmatprep.subr.bf16.mxu1 %v2966_v33  ;;  %2672 = vmatprep.subr.bf16.mxu0 %v4236_v20 }
 0x3d0   : > { %v2914_v5 = vpop.eup %2913 }
 0x3d1   : > { %2038 = vmatpush1.bf16.msra.mxu1 %v2967_v47  ;;  %2673 = vmatpush3.bf16.msra.mxu0 %v3650_v10  ;;  %v1885_v8 = vmul.f32 %v2914_v5, %v1884_v4 }
 0x3d2   : > { %2039 = vmatprep.subr.bf16.mxu1 %v2968_v24  ;;  %2674 = vmatprep.subr.bf16.mxu0 %v4236_v20 }
 0x3d3   : > { %v1887_v9 = vadd.f32 %v1886_v6, %v1885_v8 }
 0x3d5   : > { %2040 = vmatpush1.bf16.msra.mxu1 %v2969_v38  ;;  %2675 = vmatpush3.bf16.msra.mxu0 %v3656_v12  ;;  %v3987_v7 = vsel %vm1895_vm15, %v1887_v9, %v3928_v60 }
 0x3d6   : > { %v1900_v42 = vpack.c.bf16 %v3987_v7, %v3987_v7 }
 0x3d8   : > { %2414 = vst [vmem:[%s3425_s23 + $0x4] sm:$0xf] %v1900_v42  ;;  %2058 = vmatmul.mubr.bf16.vlgmr.msra.gmra.mrb[40].mxu1 %v1900_v42  ;;  %2677 = vmatmul.mubr.bf16.vlgmr.msra.gmra.mrb[40].mxu0 %v1900_v42 }
 0x48b   : > { %v1942_v10 = vpop.f32.mrb[36].mxu1  ;;  %v1983_v11 = vpop.f32.mrb[36].mxu0 }
 0x48c   : > { %v1989_v20 = vadd.f32 %v1942_v10, %v4265_v44  ;;  %v1944_v48 = vpop.f32.mrb[37].mxu1  ;;  %v2658_v50 = vpop.f32.mrb[37].mxu0  ;;  %v2003_v14 = vadd.f32 %v3781_v27, %v1983_v11 }
 0x48d   : > { %v1996_v55 = vadd.f32 %v1944_v48, %v4266_v53  ;;  %v1946_v57 = vpop.f32.mrb[38].mxu1  ;;  %v1986_v59 = vpop.f32.mrb[38].mxu0 }
 0x48e   : > { %v2415_v12 = vmul.f32 -1.442695, %v1989_v20  ;;  %v1947_v62 = vpop.f32.mrb[39].mxu1  ;;  %v2659_v60 = vpop.f32.mrb[39].mxu0 }
 0x48f   : > { %v2416_v63 = vmul.f32 -1.442695, %v1996_v55 }
 0x490   : > { %2915 = vpow2.f32 %v2415_v12 }
 0x491   : > { %2917 = vpow2.f32 %v2416_v63 }
 0x49a   : > { %v2916_v1 = vpop.eup %2915 }
 0x49b   : > { %v1993_v23 = vadd.f32 1.0, %v2916_v1  ;;  %v2918_v16 = vpop.eup %2917 }
 0x49c   : > { %v2000_v2 = vadd.f32 1.0, %v2918_v16 }
 0x49d   : > { %2919 = vrcp.f32 %v1993_v23 }
 0x49e   : > { %2921 = vrcp.f32 %v2000_v2 }
 0x4a7   : > { %v2920_v26 = vpop.eup %2919 }
 0x4a8   : > { %v2004_v18 = vmul.f32 %v2920_v26, %v2003_v14  ;;  %v2922_v49 = vpop.eup %2921 }
 0x4a9   : > { %v2007_v31 = vsub.f32 1.0, %v2922_v49  ;;  %v2009_v35 = vmul.f32 %v2922_v49, %v3960_v13 }
 0x4aa   : > { %v2005_v30 = vadd.f32 %v2004_v18, %v4267_v3 }
 0x4ab   : > { %v2059_v52 = vpop.f32.mrb[40].mxu1  ;;  %v3996_v40 = vpop.f32.mrb[40].mxu0 }
 0x4ac   : > { %2923 = vtanh.f32 %v2005_v30  ;;  %v2106_v22 = vadd.f32 %v2059_v52, %v4268_v43  ;;  %v2061_v21 = vpop.f32.mrb[41].mxu1  ;;  %v2678_v54 = vpop.f32.mrb[41].mxu0 }
 0x4ad   : > { %v2113_v15 = vadd.f32 %v2061_v21, %v4269_v32  ;;  %v2063_v19 = vpop.f32.mrb[42].mxu1  ;;  %v2103_v29 = vpop.f32.mrb[42].mxu0 }
 0x4ae   : > { %v2417_v27 = vmul.f32 -1.442695, %v2106_v22  ;;  %v2064_v46 = vpop.f32.mrb[43].mxu1  ;;  %v2679_v41 = vpop.f32.mrb[43].mxu0 }
 0x4af   : > { %v2418_v58 = vmul.f32 -1.442695, %v2113_v15 }
 0x4b0   : > { %2925 = vpow2.f32 %v2417_v27 }
 0x4b1   : > { %2927 = vpow2.f32 %v2418_v58 }
 0x4b6   : > { %v2924_v28 = vpop.eup %2923 }
 0x4b7   : > { %v2008_v51 = vmul.f32 %v2924_v28, %v2007_v31 }
 0x4b9   : > { %v2010_v61 = vadd.f32 %v2009_v35, %v2008_v51 }
 0x4ba   : > { %v2926_v39 = vpop.eup %2925 }
 0x4bb   : > { %v2110_v37 = vadd.f32 1.0, %v2926_v39  ;;  %v2019_v25 = vsel %vm2018_vm0, %v2010_v61, %v3960_v13 }
 0x4bc   : > { %v2136_v0 = vpack.c.bf16 %v2019_v25, %v2019_v25  ;;  %2141 = vst [vmem:[#allocation2] sm:$0xff] %v2019_v25 }
 0x4bd   : > { %2929 = vrcp.f32 %v2110_v37 }
 0x4be   : > { %2419 = vst [vmem:[%s3423_s5 + $0xc] sm:$0xf] %v2136_v0 }
 0x4bf   : > { %3039 = shalt.err (!%p3036_p5)
}
 0x4c0   : > { %s3040_s5 = scalar_lea.hbm %s4007_s18, 256  ;;  %s3044_s20 = scalar_lea.hbm %s4126_s11, 512 }
 0x4c1   : > { %p3041_p8 = scmp.ne.s32.totalorder %s4007_s18, %s3040_s5  ;;  %p3045_p7 = scmp.lt.u32.totalorder %s4007_s18, %s4126_s11 }
 0x4c2   : > { %p3046_p12 = scmp.lt.u32.totalorder %s3044_s20, %s3040_s5  ;;  %p3048_p3 = scmp.lt.u32.totalorder %s3040_s5, %s4007_s18 }
 0x4c3   : > { %p3042_p6 = pnand %p3041_p8, %p4271_p4 }
 0x4c4   : > { %p3047_p1 = por %p3046_p12, %p3045_p7 }
 0x4c5   : > { %p3043_p11 = pneg %p3042_p6 }
 0x4c6   : > { %p3049_p9 = por %p3048_p3, %p3047_p1 }
 0x4c8   : > { %p3050_p10 = pnand %p3049_p9, %p3043_p11 }
 0x4ca   : > { %3053 = shalt.err (!%p3050_p10)
}
 0x4cb   : > { %s3163_s30 = smov 64   ;;  %s3164_s14 = smov 4   ;;  %v2928_v13 = vpop.eup %2927  ;;  %v2120_v45 = vadd.f32 %v3802_v56, %v3996_v40  ;;  %v4272_v5 = vld [vmem:[#allocation61_spill] sm:$0xff]  ;;  %v2133_v36 = vpop.permute.xlu1 %2132 }
 0x4cc   : > { %2688 = dma.vmem_to_hbm [thread:$0]  (%p4271_p4), %s4009_s19, 256, %s4007_s18, %s4014_s29, %s3163_s30, %s3163_s30, %s3164_s14   ;;  %v2117_v34 = vadd.f32 1.0, %v2928_v13  ;;  %v2930_v33 = vpop.eup %2929  ;;  %vm2134_vm1 = vcmp.eq.s32.totalorder %v2133_v36, 1 }
 0x4cd   : > { %v2121_v4 = vmul.f32 %v2930_v33, %v2120_v45  ;;  %s4273_s17 = sld [smem:[#allocation27_spill]]  ;;  %s4274_s19 = ssub.s32 1, %s3267_s28 }
 0x4ce   : > { %2931 = vrcp.f32 %v2117_v34  ;;  %s2429_s18 = sshll.u32 %s4274_s19, 8  ;;  %s2179_s29 = sshll.u32 %s3425_s23, 4  ;;  %s4054_s29 = int_to_ptr.vmem [resolvable:$true] %s2179_s29 }
 0x4cf   : > { %v2122_v6 = vadd.f32 %v2121_v4, %v4272_v5  ;;  %s4275_s27 = sld [smem:[#allocation64_spill]]  ;;  %s4277_s26 = sand.u32 1, %s3132_s22  }
 0x4d0   : > { %s4059_s28 = scalar_lea.sflag [#allocation13], %s4277_s26  ;;  %s3054_s16 = scalar_lea.vmem %s4054_s29, 256 }
 0x4d1   : > { %2933 = vtanh.f32 %v2122_v6  ;;  %p3055_p4 = scmp.ne.s32.totalorder %s4054_s29, %s3054_s16  ;;  %s3165_s20 = smov [#allocation12]  }
 0x4d2   : > { %s3058_s13 = sshll.u32 %s3165_s20, 4  ;;  %s3059_s13 = int_to_ptr.vmem [resolvable:$false] %s3058_s13 }
 0x4d3   : > { %p4278_p13 = scmp.ne.s32.totalorder %s4273_s17, 0  ;;  %s3060_s15 = scalar_lea.vmem %s3059_s13, 512 }
 0x4d4   : > { %p3061_p5 = scmp.lt.s32.totalorder %s4054_s29, %s3059_s13  ;;  %p3062_p8 = scmp.lt.s32.totalorder %s3060_s15, %s3054_s16 }
 0x4d5   : > { %s4276_s5 = smov %s4275_s27  ;;  %s4052_s24 = scalar_lea.hbm %s4275_s27, %s2429_s18 }
 0x4d6   : > { %p3056_p2 = pnand %p3055_p4, %p4278_p13  ;;  %p3063_p6 = por %p3062_p8, %p3061_p5 }
 0x4d8   : > { %v2932_v47 = vpop.eup %2931  ;;  %p3057_p0 = pneg %p3056_p2 }
 0x4d9   : > { %v2124_v8 = vsub.f32 1.0, %v2932_v47  ;;  %v2126_v38 = vmul.f32 %v2932_v47, %v3987_v7 }
 0x4da   : > { %p3064_p11 = pnand %p3063_p6, %p3057_p0 }
 0x4db   : > { %v2934_v24 = vpop.eup %2933 }
 0x4dc   : > { %v2125_v9 = vmul.f32 %v2934_v24, %v2124_v8 }
 0x4de   : > { %v2127_v42 = vadd.f32 %v2126_v38, %v2125_v9 }
 0x4e0   : > { %v2135_v56 = vsel %vm2134_vm1, %v2127_v42, %v3987_v7 }
 0x4e1   : > { %v2139_v10 = vpack.c.bf16 %v2135_v56, %v2135_v56  ;;  %2142 = vst [vmem:[#allocation3] sm:$0xff] %v2135_v56 }
 0x4e3   : > { %2140 = vst [vmem:[%s3425_s23] sm:$0xf] %v2139_v10 }
 0x4e4   : > { %3067 = shalt.err (!%p3064_p11)
}
 0x4e5   : > { %s3068_s23 = scalar_lea.hbm %s4052_s24, 256  ;;  %s3072_s12 = scalar_lea.hbm %s4276_s5, 512 }
 0x4e6   : > { %p3069_p7 = scmp.ne.s32.totalorder %s4052_s24, %s3068_s23  ;;  %p3073_p3 = scmp.lt.u32.totalorder %s4052_s24, %s4276_s5 }
 0x4e7   : > { %p3074_p9 = scmp.lt.u32.totalorder %s3072_s12, %s3068_s23  ;;  %p3076_p4 = scmp.lt.u32.totalorder %s3068_s23, %s4052_s24 }
 0x4e8   : > { %p3070_p12 = pnand %p3069_p7, %p4278_p13 }
 0x4e9   : > { %p3075_p10 = por %p3074_p9, %p3073_p3 }
 0x4ea   : > { %p3071_p1 = pneg %p3070_p12 }
 0x4eb   : > { %p3077_p2 = por %p3076_p4, %p3075_p10 }
 0x4ed   : > { %p3078_p0 = pnand %p3077_p2, %p3071_p1 }
 0x4ef   : > { %3081 = shalt.err (!%p3078_p0)
}
 0x4f0   : > { %2689 = dma.vmem_to_hbm [thread:$0]  (%p4278_p13), %s4054_s29, 256, %s4052_s24, %s4059_s28, %s3163_s30, %s3163_s30, %s3164_s14  }
 0x4f1 PF: > { %s4279_s26 = sld [smem:[#allocation22_spill]]  ;;  %s4280_s16 = sld [smem:[#allocation20_spill]] }
 0x4f2   : > { %s4281_s20 = sld [smem:[#allocation25_spill]] }
 0x4f7   : > { %p2710_p5 = scmp.ge.s32.totalorder %s4279_s26, 2  ;;  %s2194_s13 = sand.u32 1, %s4280_s16  }
 0x4f8   : > { %p4282_p8 = scmp.ne.s32.totalorder %s4281_s20, 0  ;;  %s2195_s15 = scalar_lea.sflag [#allocation8], %s2194_s13 }
 0x4fa   : > { %p2700_p6 = pnand %p2710_p5, %p4282_p8 }
 0x4fc   : > { %3119 = dma.done.wait (!%p2700_p6), %s2195_s15, 256  }
 0x4fd   : > { %3121 = vsyncadd (!%p2700_p6), %s2195_s15, 4294967040  ;;  %s4283_s23 = sld [smem:[#allocation18_spill]]  ;;  %s4284_s17 = sld [smem:[#allocation28_spill]] }
 0x503   : > { %s2203_s19 = sand.u32 1, %s4283_s23   ;;  %p4285_p11 = scmp.ne.s32.totalorder %s4284_s17, 0 }
 0x504   : > { %s2204_s18 = scalar_lea.sflag [#allocation13], %s2203_s19 }
 0x505   : > { %p2703_p7 = pnand %p2710_p5, %p4285_p11 }
 0x507   : > { %3123 = dma.done.wait (!%p2703_p7), %s2204_s18, 256  }
 0x508   : > { %3125 = vsyncadd (!%p2703_p7), %s2204_s18, 4294967040  ;;  %s4286_s27 = sld [smem:[#allocation23_spill]]  ;;  %s4287_s30 = sld [smem:[#allocation19_spill]] }
 0x509   : > { %s4288_s23 = sld [smem:[#allocation26_spill]]  ;;  %s4289_s14 = sld [smem:[#allocation21_spill]] }
 0x50a   : > { %s4290_s26 = sld [smem:[#allocation24_spill]]  ;;  %s4291_s21 = smov %s3132_s22 }
 0x50b   : > { %s4293_s24 = smov %s3144_s25 }
 0x50e   : > { %p28_p13 = scmp.ge.s32.totalorder %s4286_s27, 4   ;;  %s4292_s22 = smov %s4287_s30 }
 0x50f   : > { %s4294_s25 = smov %s4289_s14 }
 0x510   :  { %30 = sbr.rel (!%p28_p13) target bundleno = 12 (0xc), region = 146 }
 0x517   :  { %2209 = vsyncpa [#allocation7], 1 }
 0x518   :  { %2211 = vsyncpa [#allocation7 + $0x1], 1 }
 0x519   :  { %2212 = vsyncpa [#allocation10], 1 }
 0x51a   :  { %2213 = vsyncpa [#allocation8], 1 }
 0x51b   :  { %2215 = vsyncpa [#allocation8 + $0x1], 1 }
 0x51c   :  { %2216 = vsyncpa [#allocation13], 1 }
 0x51d   :  { %2218 = vsyncpa [#allocation13 + $0x1], 1 }

</bundles_post_ra>
